<compile_context>
chip_gen: v7x
topology: tpu7x:2x2x1
jax: 0.10.0
libtpu: 0.0.40
codegen_flags: <defaults>
</compile_context>

<pallas_src>
import jax
import jax.numpy as jnp
from jax.experimental import pallas as pl
from jax.experimental.pallas import tpu as pltpu  # noqa: F401  (kept for TPU backend clarity)


# ----------------------------------------------------------------------------
# BlockSpec helper: whole array as one block (no grid).
# ----------------------------------------------------------------------------
def _full_spec(shape):
    zeros = (0,) * len(shape)
    return pl.BlockSpec(shape, lambda: zeros)


# ----------------------------------------------------------------------------
# Fused conv (+bias +ReLU) + 2x2/2 max-pool kernel.
#   p_ref : (4, K, M)   im2col patches, slab s = pool-window offset (p, q),
#                       K = Cin*k*k (PyTorch (ci,di,dj) order), M = B*Hp*Wp.
#   w_ref : (Cout, K)   flattened conv weight.
#   b_ref : (Cout, 1)   bias (broadcast along lanes).
#   o_ref : (Cout, M)   pooled, ReLU'd output (lane-dense: M is the long axis).
# ----------------------------------------------------------------------------
def _conv_pool_kernel(p_ref, w_ref, b_ref, o_ref):
    w = w_ref[...]
    y0 = jnp.dot(w, p_ref[0], preferred_element_type=jnp.float32)
    y1 = jnp.dot(w, p_ref[1], preferred_element_type=jnp.float32)
    y2 = jnp.dot(w, p_ref[2], preferred_element_type=jnp.float32)
    y3 = jnp.dot(w, p_ref[3], preferred_element_type=jnp.float32)
    # 2x2 max-pool == elementwise max over the 4 pool-offset slabs.
    acc = jnp.maximum(jnp.maximum(y0, y1), jnp.maximum(y2, y3))
    # bias + ReLU are monotonic, so applying them after the max is identical
    # to PyTorch's pool(relu(conv(x)+b)).
    acc = jnp.maximum(acc + b_ref[...], 0.0)
    o_ref[...] = acc.astype(o_ref.dtype)


def pooled_im2col(x, k):
    """x: (B, C, H, W) NCHW -> P: (4, C*k*k, B*Hp*Wp).

    P[2p+q, ci*k*k + di*k + dj, b*Hp*Wp + i*Wp + j] = x[b, ci, 2i+p+di, 2j+q+dj]
    i.e. slab s holds the im2col matrix of the conv outputs that land at pool
    window offset (p, q)."""
    B, C, H, W = x.shape
    Ho, Wo = H - k + 1, W - k + 1
    Hp, Wp = Ho // 2, Wo // 2
    slabs = []
    for p in range(2):
        for q in range(2):
            cols = []
            for di in range(k):
                for dj in range(k):
                    h0, w0 = p + di, q + dj
                    sl = jax.lax.slice(
                        x,
                        (0, 0, h0, w0),
                        (B, C, h0 + 2 * (Hp - 1) + 1, w0 + 2 * (Wp - 1) + 1),
                        (1, 1, 2, 2),
                    )  # (B, C, Hp, Wp)
                    cols.append(sl)
            patch = jnp.stack(cols, axis=0)            # (k*k, B, C, Hp, Wp)
            patch = patch.transpose(2, 0, 1, 3, 4)     # (C, k*k, B, Hp, Wp)
            slabs.append(patch.reshape(C * k * k, B * Hp * Wp))
    return jnp.stack(slabs, axis=0), (B, Hp, Wp)


def conv2d_relu_pool(x, w_mat, b_col, k=5):
    """Valid conv (stride 1) + bias + ReLU + 2x2/2 max-pool, one pallas_call.

    x: (B, Cin, H, W) NCHW; w_mat: (Cout, Cin*k*k); b_col: (Cout, 1).
    Returns NCHW pooled output (B, Cout, Hp, Wp)."""
    cout = w_mat.shape[0]
    P, (B, Hp, Wp) = pooled_im2col(x, k)
    _, K, M = P.shape
    out = pl.pallas_call(
        _conv_pool_kernel,
        out_shape=jax.ShapeDtypeStruct((cout, M), jnp.float32),
        in_specs=[_full_spec((4, K, M)),
                  _full_spec((cout, K)),
                  _full_spec((cout, 1))],
        out_specs=_full_spec((cout, M)),
    )(P, w_mat, b_col)
    # (Cout, B*Hp*Wp) -> NCHW so the later .view(-1, 16*5*5) matches PyTorch.
    return out.reshape(cout, B, Hp, Wp).transpose(1, 0, 2, 3)


# ----------------------------------------------------------------------------
# Fused fc1 -> fc2 -> fc3 -> fc4 kernel (weights pre-transposed to (K, N)).
# ----------------------------------------------------------------------------
def _fc_stack_kernel(x_ref, w1_ref, b1_ref, w2_ref, b2_ref, w3_ref, b3_ref,
                     w4_ref, b4_ref, o_ref):
    h = jnp.dot(x_ref[...], w1_ref[...], preferred_element_type=jnp.float32)
    h = jnp.maximum(h + b1_ref[...], 0.0)
    h = jnp.dot(h, w2_ref[...], preferred_element_type=jnp.float32)
    h = jnp.maximum(h + b2_ref[...], 0.0)
    h = jnp.dot(h, w3_ref[...], preferred_element_type=jnp.float32)
    h = jnp.maximum(h + b3_ref[...], 0.0)
    h = jnp.dot(h, w4_ref[...], preferred_element_type=jnp.float32) + b4_ref[...]
    o_ref[...] = h.astype(o_ref.dtype)


def fc_stack(x, p):
    B = x.shape[0]
    n_out = p["fc4_w"].shape[1]
    args = (x,
            p["fc1_w"], p["fc1_b"],
            p["fc2_w"], p["fc2_b"],
            p["fc3_w"], p["fc3_b"],
            p["fc4_w"], p["fc4_b"])
    return pl.pallas_call(
        _fc_stack_kernel,
        out_shape=jax.ShapeDtypeStruct((B, n_out), jnp.float32),
        in_specs=[_full_spec(a.shape) for a in args],
        out_specs=_full_spec((B, n_out)),
    )(*args)


# ----------------------------------------------------------------------------
# Parameter init (deterministic, synthetic).  Weights are stored in the GEMM
# layouts the kernels consume, so no per-forward transposes are needed.
# ----------------------------------------------------------------------------
def init_params(key):
    ks = jax.random.split(key, 12)
    scale = 0.05

    def w(k, shape):
        return (scale * jax.random.normal(k, shape)).astype(jnp.float32)

    return {
        # conv weights flattened once: (Cout, Cin*k*k); biases as (Cout, 1).
        "conv1_w": w(ks[0], (6, 3, 5, 5)).reshape(6, 3 * 5 * 5),
        "conv1_b": w(ks[1], (6,)).reshape(6, 1),
        "conv2_w": w(ks[2], (16, 6, 5, 5)).reshape(16, 6 * 5 * 5),
        "conv2_b": w(ks[3], (16,)).reshape(16, 1),
        # fc weights pre-transposed once: (K, N); biases as (1, N).
        "fc1_w": w(ks[4], (120, 16 * 5 * 5)).T,
        "fc1_b": w(ks[5], (120,)).reshape(1, 120),
        "fc2_w": w(ks[6], (84, 120)).T,
        "fc2_b": w(ks[7], (84,)).reshape(1, 84),
        "fc3_w": w(ks[8], (10, 84)).T,
        "fc3_b": w(ks[9], (10,)).reshape(1, 10),
        "fc4_w": w(ks[10], (2, 10)).T,
        "fc4_b": w(ks[11], (2,)).reshape(1, 2),
    }


# ----------------------------------------------------------------------------
# Forward pass (mirrors Net.forward exactly).
# ----------------------------------------------------------------------------
@jax.jit
def net_forward(params, x):
    # x: (B, 3, 32, 32) NCHW float32
    x = conv2d_relu_pool(x, params["conv1_w"], params["conv1_b"])  # (B, 6, 14, 14)
    x = conv2d_relu_pool(x, params["conv2_w"], params["conv2_b"])  # (B, 16, 5, 5)
    x = x.reshape(-1, 16 * 5 * 5)                                  # (B, 400) == torch .view
    x = fc_stack(x, params)                                        # (B, 2)
    return x


if __name__ == "__main__":
    key = jax.random.PRNGKey(0)
    pkey, xkey = jax.random.split(key)
    params = init_params(pkey)
    # fc1 expects 16*5*5 features -> input must be 3 channels, 32x32 spatial.
    x = jax.random.normal(xkey, (2, 3, 32, 32), dtype=jnp.float32)
    out = jax.block_until_ready(net_forward(params, x))
    assert out.shape == (2, 2), out.shape
    assert bool(jnp.all(jnp.isfinite(out)))
    print("KERNEL_OK")
</pallas_src>

<mosaic_0001>
module attributes {stable_mosaic.version = 11 : i64} {
  func.func @_conv_pool_kernel(%arg0: memref<4x75x392xf32, #tpu.memory_space<vmem>>, %arg1: memref<6x75xf32, #tpu.memory_space<vmem>>, %arg2: memref<6x1xf32, #tpu.memory_space<vmem>>, %arg3: memref<6x392xf32, #tpu.memory_space<vmem>>) attributes {dimension_semantics = [], scalar_prefetch = 0 : i64, scratch_operands = 0 : i64, tpu.core_type = #tpu.core_type<tc>} {
    %c0 = arith.constant 0 : index
    %c0_0 = arith.constant 0 : index
    %0 = vector.load %arg1[%c0, %c0_0] : memref<6x75xf32, #tpu.memory_space<vmem>>, vector<6x75xf32>
    %c0_1 = arith.constant 0 : index
    %c0_2 = arith.constant 0 : index
    %c0_3 = arith.constant 0 : index
    %1 = vector.load %arg0[%c0_1, %c0_2, %c0_3] : memref<4x75x392xf32, #tpu.memory_space<vmem>>, vector<1x75x392xf32>
    %2 = vector.shape_cast %1 : vector<1x75x392xf32> to vector<75x392xf32>
    %cst = arith.constant dense<0.000000e+00> : vector<6x392xf32>
    %3 = tpu.matmul %0, %2, %cst {dimension_numbers = #tpu.dot_dimension_numbers<[1], [0], [0], [1], [0, 0, 1, 1], [], []>} : vector<6x75xf32>, vector<75x392xf32>, vector<6x392xf32> -> vector<6x392xf32>
    %c1 = arith.constant 1 : index
    %c0_4 = arith.constant 0 : index
    %c0_5 = arith.constant 0 : index
    %4 = vector.load %arg0[%c1, %c0_4, %c0_5] : memref<4x75x392xf32, #tpu.memory_space<vmem>>, vector<1x75x392xf32>
    %5 = vector.shape_cast %4 : vector<1x75x392xf32> to vector<75x392xf32>
    %cst_6 = arith.constant dense<0.000000e+00> : vector<6x392xf32>
    %6 = tpu.matmul %0, %5, %cst_6 {dimension_numbers = #tpu.dot_dimension_numbers<[1], [0], [0], [1], [0, 0, 1, 1], [], []>} : vector<6x75xf32>, vector<75x392xf32>, vector<6x392xf32> -> vector<6x392xf32>
    %c2 = arith.constant 2 : index
    %c0_7 = arith.constant 0 : index
    %c0_8 = arith.constant 0 : index
    %7 = vector.load %arg0[%c2, %c0_7, %c0_8] : memref<4x75x392xf32, #tpu.memory_space<vmem>>, vector<1x75x392xf32>
    %8 = vector.shape_cast %7 : vector<1x75x392xf32> to vector<75x392xf32>
    %cst_9 = arith.constant dense<0.000000e+00> : vector<6x392xf32>
    %9 = tpu.matmul %0, %8, %cst_9 {dimension_numbers = #tpu.dot_dimension_numbers<[1], [0], [0], [1], [0, 0, 1, 1], [], []>} : vector<6x75xf32>, vector<75x392xf32>, vector<6x392xf32> -> vector<6x392xf32>
    %c3 = arith.constant 3 : index
    %c0_10 = arith.constant 0 : index
    %c0_11 = arith.constant 0 : index
    %10 = vector.load %arg0[%c3, %c0_10, %c0_11] : memref<4x75x392xf32, #tpu.memory_space<vmem>>, vector<1x75x392xf32>
    %11 = vector.shape_cast %10 : vector<1x75x392xf32> to vector<75x392xf32>
    %cst_12 = arith.constant dense<0.000000e+00> : vector<6x392xf32>
    %12 = tpu.matmul %0, %11, %cst_12 {dimension_numbers = #tpu.dot_dimension_numbers<[1], [0], [0], [1], [0, 0, 1, 1], [], []>} : vector<6x75xf32>, vector<75x392xf32>, vector<6x392xf32> -> vector<6x392xf32>
    %13 = arith.maximumf %3, %6 : vector<6x392xf32>
    %14 = arith.maximumf %9, %12 : vector<6x392xf32>
    %15 = arith.maximumf %13, %14 : vector<6x392xf32>
    %c0_13 = arith.constant 0 : index
    %c0_14 = arith.constant 0 : index
    %16 = vector.load %arg2[%c0_13, %c0_14] : memref<6x1xf32, #tpu.memory_space<vmem>>, vector<6x1xf32>
    %17 = vector.broadcast %16 : vector<6x1xf32> to vector<6x392xf32>
    %18 = arith.addf %15, %17 : vector<6x392xf32>
    %cst_15 = arith.constant 0.000000e+00 : f32
    %19 = vector.broadcast %cst_15 : f32 to vector<6x392xf32>
    %20 = arith.maximumf %18, %19 : vector<6x392xf32>
    %c0_16 = arith.constant 0 : index
    %c0_17 = arith.constant 0 : index
    %21 = vector.load %arg3[%c0_16, %c0_17] : memref<6x392xf32, #tpu.memory_space<vmem>>, vector<6x392xf32>
    tpu.vector_store %arg3[%c0_16, %c0_17], %20 {strides = array<i32>} : memref<6x392xf32, #tpu.memory_space<vmem>>, vector<6x392xf32>,
    return
  }
}

module attributes {stable_mosaic.version = 11 : i64} {
  func.func @_conv_pool_kernel(%arg0: memref<4x150x50xf32, #tpu.memory_space<vmem>>, %arg1: memref<16x150xf32, #tpu.memory_space<vmem>>, %arg2: memref<16x1xf32, #tpu.memory_space<vmem>>, %arg3: memref<16x50xf32, #tpu.memory_space<vmem>>) attributes {dimension_semantics = [], scalar_prefetch = 0 : i64, scratch_operands = 0 : i64, tpu.core_type = #tpu.core_type<tc>} {
    %c0 = arith.constant 0 : index
    %c0_0 = arith.constant 0 : index
    %0 = vector.load %arg1[%c0, %c0_0] : memref<16x150xf32, #tpu.memory_space<vmem>>, vector<16x150xf32>
    %c0_1 = arith.constant 0 : index
    %c0_2 = arith.constant 0 : index
    %c0_3 = arith.constant 0 : index
    %1 = vector.load %arg0[%c0_1, %c0_2, %c0_3] : memref<4x150x50xf32, #tpu.memory_space<vmem>>, vector<1x150x50xf32>
    %2 = vector.shape_cast %1 : vector<1x150x50xf32> to vector<150x50xf32>
    %cst = arith.constant dense<0.000000e+00> : vector<16x50xf32>
    %3 = tpu.matmul %0, %2, %cst {dimension_numbers = #tpu.dot_dimension_numbers<[1], [0], [0], [1], [0, 0, 1, 1], [], []>} : vector<16x150xf32>, vector<150x50xf32>, vector<16x50xf32> -> vector<16x50xf32>
    %c1 = arith.constant 1 : index
    %c0_4 = arith.constant 0 : index
    %c0_5 = arith.constant 0 : index
    %4 = vector.load %arg0[%c1, %c0_4, %c0_5] : memref<4x150x50xf32, #tpu.memory_space<vmem>>, vector<1x150x50xf32>
    %5 = vector.shape_cast %4 : vector<1x150x50xf32> to vector<150x50xf32>
    %cst_6 = arith.constant dense<0.000000e+00> : vector<16x50xf32>
    %6 = tpu.matmul %0, %5, %cst_6 {dimension_numbers = #tpu.dot_dimension_numbers<[1], [0], [0], [1], [0, 0, 1, 1], [], []>} : vector<16x150xf32>, vector<150x50xf32>, vector<16x50xf32> -> vector<16x50xf32>
    %c2 = arith.constant 2 : index
    %c0_7 = arith.constant 0 : index
    %c0_8 = arith.constant 0 : index
    %7 = vector.load %arg0[%c2, %c0_7, %c0_8] : memref<4x150x50xf32, #tpu.memory_space<vmem>>, vector<1x150x50xf32>
    %8 = vector.shape_cast %7 : vector<1x150x50xf32> to vector<150x50xf32>
    %cst_9 = arith.constant dense<0.000000e+00> : vector<16x50xf32>
    %9 = tpu.matmul %0, %8, %cst_9 {dimension_numbers = #tpu.dot_dimension_numbers<[1], [0], [0], [1], [0, 0, 1, 1], [], []>} : vector<16x150xf32>, vector<150x50xf32>, vector<16x50xf32> -> vector<16x50xf32>
    %c3 = arith.constant 3 : index
    %c0_10 = arith.constant 0 : index
    %c0_11 = arith.constant 0 : index
    %10 = vector.load %arg0[%c3, %c0_10, %c0_11] : memref<4x150x50xf32, #tpu.memory_space<vmem>>, vector<1x150x50xf32>
    %11 = vector.shape_cast %10 : vector<1x150x50xf32> to vector<150x50xf32>
    %cst_12 = arith.constant dense<0.000000e+00> : vector<16x50xf32>
    %12 = tpu.matmul %0, %11, %cst_12 {dimension_numbers = #tpu.dot_dimension_numbers<[1], [0], [0], [1], [0, 0, 1, 1], [], []>} : vector<16x150xf32>, vector<150x50xf32>, vector<16x50xf32> -> vector<16x50xf32>
    %13 = arith.maximumf %3, %6 : vector<16x50xf32>
    %14 = arith.maximumf %9, %12 : vector<16x50xf32>
    %15 = arith.maximumf %13, %14 : vector<16x50xf32>
    %c0_13 = arith.constant 0 : index
    %c0_14 = arith.constant 0 : index
    %16 = vector.load %arg2[%c0_13, %c0_14] : memref<16x1xf32, #tpu.memory_space<vmem>>, vector<16x1xf32>
    %17 = vector.broadcast %16 : vector<16x1xf32> to vector<16x50xf32>
    %18 = arith.addf %15, %17 : vector<16x50xf32>
    %cst_15 = arith.constant 0.000000e+00 : f32
    %19 = vector.broadcast %cst_15 : f32 to vector<16x50xf32>
    %20 = arith.maximumf %18, %19 : vector<16x50xf32>
    %c0_16 = arith.constant 0 : index
    %c0_17 = arith.constant 0 : index
    %21 = vector.load %arg3[%c0_16, %c0_17] : memref<16x50xf32, #tpu.memory_space<vmem>>, vector<16x50xf32>
    tpu.vector_store %arg3[%c0_16, %c0_17], %20 {strides = array<i32>} : memref<16x50xf32, #tpu.memory_space<vmem>>, vector<16x50xf32>,
    return
  }
}

module attributes {stable_mosaic.version = 11 : i64} {
  func.func @_fc_stack_kernel(%arg0: memref<2x400xf32, #tpu.memory_space<vmem>>, %arg1: memref<400x120xf32, #tpu.memory_space<vmem>>, %arg2: memref<1x120xf32, #tpu.memory_space<vmem>>, %arg3: memref<120x84xf32, #tpu.memory_space<vmem>>, %arg4: memref<1x84xf32, #tpu.memory_space<vmem>>, %arg5: memref<84x10xf32, #tpu.memory_space<vmem>>, %arg6: memref<1x10xf32, #tpu.memory_space<vmem>>, %arg7: memref<10x2xf32, #tpu.memory_space<vmem>>, %arg8: memref<1x2xf32, #tpu.memory_space<vmem>>, %arg9: memref<2x2xf32, #tpu.memory_space<vmem>>) attributes {dimension_semantics = [], scalar_prefetch = 0 : i64, scratch_operands = 0 : i64, tpu.core_type = #tpu.core_type<tc>} {
    %c0 = arith.constant 0 : index
    %c0_0 = arith.constant 0 : index
    %0 = vector.load %arg0[%c0, %c0_0] : memref<2x400xf32, #tpu.memory_space<vmem>>, vector<2x400xf32>
    %c0_1 = arith.constant 0 : index
    %c0_2 = arith.constant 0 : index
    %1 = vector.load %arg1[%c0_1, %c0_2] : memref<400x120xf32, #tpu.memory_space<vmem>>, vector<400x120xf32>
    %cst = arith.constant dense<0.000000e+00> : vector<2x120xf32>
    %2 = tpu.matmul %0, %1, %cst {dimension_numbers = #tpu.dot_dimension_numbers<[1], [0], [0], [1], [0, 0, 1, 1], [], []>} : vector<2x400xf32>, vector<400x120xf32>, vector<2x120xf32> -> vector<2x120xf32>
    %c0_3 = arith.constant 0 : index
    %c0_4 = arith.constant 0 : index
    %3 = vector.load %arg2[%c0_3, %c0_4] : memref<1x120xf32, #tpu.memory_space<vmem>>, vector<1x120xf32>
    %4 = vector.broadcast %3 : vector<1x120xf32> to vector<2x120xf32>
    %5 = arith.addf %2, %4 : vector<2x120xf32>
    %cst_5 = arith.constant 0.000000e+00 : f32
    %6 = vector.broadcast %cst_5 : f32 to vector<2x120xf32>
    %7 = arith.maximumf %5, %6 : vector<2x120xf32>
    %c0_6 = arith.constant 0 : index
    %c0_7 = arith.constant 0 : index
    %8 = vector.load %arg3[%c0_6, %c0_7] : memref<120x84xf32, #tpu.memory_space<vmem>>, vector<120x84xf32>
    %cst_8 = arith.constant dense<0.000000e+00> : vector<2x84xf32>
    %9 = tpu.matmul %7, %8, %cst_8 {dimension_numbers = #tpu.dot_dimension_numbers<[1], [0], [0], [1], [0, 0, 1, 1], [], []>} : vector<2x120xf32>, vector<120x84xf32>, vector<2x84xf32> -> vector<2x84xf32>
    %c0_9 = arith.constant 0 : index
    %c0_10 = arith.constant 0 : index
    %10 = vector.load %arg4[%c0_9, %c0_10] : memref<1x84xf32, #tpu.memory_space<vmem>>, vector<1x84xf32>
    %11 = vector.broadcast %10 : vector<1x84xf32> to vector<2x84xf32>
    %12 = arith.addf %9, %11 : vector<2x84xf32>
    %cst_11 = arith.constant 0.000000e+00 : f32
    %13 = vector.broadcast %cst_11 : f32 to vector<2x84xf32>
    %14 = arith.maximumf %12, %13 : vector<2x84xf32>
    %c0_12 = arith.constant 0 : index
    %c0_13 = arith.constant 0 : index
    %15 = vector.load %arg5[%c0_12, %c0_13] : memref<84x10xf32, #tpu.memory_space<vmem>>, vector<84x10xf32>
    %cst_14 = arith.constant dense<0.000000e+00> : vector<2x10xf32>
    %16 = tpu.matmul %14, %15, %cst_14 {dimension_numbers = #tpu.dot_dimension_numbers<[1], [0], [0], [1], [0, 0, 1, 1], [], []>} : vector<2x84xf32>, vector<84x10xf32>, vector<2x10xf32> -> vector<2x10xf32>
    %c0_15 = arith.constant 0 : index
    %c0_16 = arith.constant 0 : index
    %17 = vector.load %arg6[%c0_15, %c0_16] : memref<1x10xf32, #tpu.memory_space<vmem>>, vector<1x10xf32>
    %18 = vector.broadcast %17 : vector<1x10xf32> to vector<2x10xf32>
    %19 = arith.addf %16, %18 : vector<2x10xf32>
    %cst_17 = arith.constant 0.000000e+00 : f32
    %20 = vector.broadcast %cst_17 : f32 to vector<2x10xf32>
    %21 = arith.maximumf %19, %20 : vector<2x10xf32>
    %c0_18 = arith.constant 0 : index
    %c0_19 = arith.constant 0 : index
    %22 = vector.load %arg7[%c0_18, %c0_19] : memref<10x2xf32, #tpu.memory_space<vmem>>, vector<10x2xf32>
    %cst_20 = arith.constant dense<0.000000e+00> : vector<2x2xf32>
    %23 = tpu.matmul %21, %22, %cst_20 {dimension_numbers = #tpu.dot_dimension_numbers<[1], [0], [0], [1], [0, 0, 1, 1], [], []>} : vector<2x10xf32>, vector<10x2xf32>, vector<2x2xf32> -> vector<2x2xf32>
    %c0_21 = arith.constant 0 : index
    %c0_22 = arith.constant 0 : index
    %24 = vector.load %arg8[%c0_21, %c0_22] : memref<1x2xf32, #tpu.memory_space<vmem>>, vector<1x2xf32>
    %25 = vector.broadcast %24 : vector<1x2xf32> to vector<2x2xf32>
    %26 = arith.addf %23, %25 : vector<2x2xf32>
    %c0_23 = arith.constant 0 : index
    %c0_24 = arith.constant 0 : index
    %27 = vector.load %arg9[%c0_23, %c0_24] : memref<2x2xf32, #tpu.memory_space<vmem>>, vector<2x2xf32>
    tpu.vector_store %arg9[%c0_23, %c0_24], %26 {strides = array<i32>} : memref<2x2xf32, #tpu.memory_space<vmem>>, vector<2x2xf32>,
    return
  }
}

</mosaic_0001>

<bundles_post_ra>
// kernel: net_forward.3
= control target key start
LH: loop header
LB: loop body
LE: loop exit
PB: predicated region body
PF: predicated region fallthrough
CT: control target
= control target key end

     0   :  { %v1158_v3 = vmov 0.0   ;;  %v1159_v8 = vmov 0   ;;  %vm59_vm0 = vcmask 1042432   ;;  %vm1160_vm1 = vmmov 1   ;;  %s1741_s0 = inlined_call_operand.vmem [shape: f32[4,75,392], index: 0, kind: input, shape index: {}]   ;;  %s1742_s1 = inlined_call_operand.vmem [shape: f32[6,75], index: 1, kind: input, shape index: {}]   ;;  %s1743_s2 = inlined_call_operand.vmem [shape: f32[6,1], index: 2, kind: input, shape index: {}]   ;;  %s1744_s3 = inlined_call_operand.vmem [shape: f32[6,392], index: 3, kind: output, shape index: {}]  }
   0x1   :  { %v16_v0 = vld [vmem:[%s1741_s0 + $0x8] sm:$0xff]  ;;  %v18_v2 = vld [vmem:[%s1741_s0 + $0x18] sm:$0xff]  ;;  %136 = vmatprep.mubr.f32.mxu0 %v1158_v3  ;;  %207 = vmatprep.mubr.f32.mxu1 %v1158_v3  ;;  %v15_v6 = vld [vmem:[%s1741_s0] sm:$0xff]  ;;  %vm55_vm3 = vcmask 613376   ;;  %vm828_vm4 = vcmask 62464  }
   0x2   :  { %v20_v1 = vld [vmem:[%s1741_s0 + $0x28] sm:$0xff]  ;;  %v22_v5 = vld [vmem:[%s1741_s0 + $0x38] sm:$0xff]  ;;  %v19_v7 = vld [vmem:[%s1741_s0 + $0x20] sm:$0xff]  ;;  %1157 = vset.pattern.permute.xlu0 %v1159_v8 }
   0x3   :  { %v978_v4 = vpack.c.bf16 %v20_v1, %v16_v0  ;;  %v1000_v9 = vpack.c.bf16 %v22_v5, %v18_v2  ;;  %v980_v10 = vpack.c.bf16 %v19_v7, %v15_v6  ;;  %v17_v11 = vld [vmem:[%s1741_s0 + $0x10] sm:$0xff]  ;;  %v24_v13 = vld [vmem:[%s1741_s0 + $0x48] sm:$0xff]  ;;  %v26_v16 = vld [vmem:[%s1741_s0 + $0x58] sm:$0xff] }
   0x4   :  { %v21_v12 = vld [vmem:[%s1741_s0 + $0x30] sm:$0xff]  ;;  %v28_v15 = vld [vmem:[%s1741_s0 + $0x68] sm:$0xff]  ;;  %v30_v17 = vld [vmem:[%s1741_s0 + $0x78] sm:$0xff] }
   0x5   :  { %979 = vmatprep.subr.bf16.mxu0 %v978_v4  ;;  %v1002_v14 = vpack.c.bf16 %v21_v12, %v17_v11  ;;  %1001 = vmatprep.subr.bf16.mxu1 %v1000_v9  ;;  %v982_v18 = vpack.c.bf16 %v28_v15, %v24_v13  ;;  %v1004_v19 = vpack.c.bf16 %v30_v17, %v26_v16  ;;  %v23_v20 = vld [vmem:[%s1741_s0 + $0x40] sm:$0xff]  ;;  %v25_v22 = vld [vmem:[%s1741_s0 + $0x50] sm:$0xff]  ;;  %v32_v25 = vld [vmem:[%s1741_s0 + $0x88] sm:$0xff] }
   0x6   :  { %981 = vmatpush1.bf16.msra.mxu0 %v980_v10  ;;  %v27_v21 = vld [vmem:[%s1741_s0 + $0x60] sm:$0xff]  ;;  %v29_v24 = vld [vmem:[%s1741_s0 + $0x70] sm:$0xff]  ;;  %v36_v26 = vld [vmem:[%s1741_s0 + $0xa8] sm:$0xff] }
   0x7   :  { %1003 = vmatpush1.bf16.msra.mxu1 %v1002_v14  ;;  %v984_v23 = vpack.c.bf16 %v27_v21, %v23_v20  ;;  %983 = vmatprep.subr.bf16.mxu0 %v982_v18  ;;  %v1006_v27 = vpack.c.bf16 %v29_v24, %v25_v22  ;;  %v986_v28 = vpack.c.bf16 %v36_v26, %v32_v25  ;;  %v34_v29 = vld [vmem:[%s1741_s0 + $0x98] sm:$0xff]  ;;  %v31_v31 = vld [vmem:[%s1741_s0 + $0x80] sm:$0xff]  ;;  %v33_v34 = vld [vmem:[%s1741_s0 + $0x90] sm:$0xff] }
   0x8   :  { %1005 = vmatprep.subr.bf16.mxu1 %v1004_v19  ;;  %v38_v30 = vld [vmem:[%s1741_s0 + $0xb8] sm:$0xff]  ;;  %v35_v33 = vld [vmem:[%s1741_s0 + $0xa0] sm:$0xff]  ;;  %v37_v35 = vld [vmem:[%s1741_s0 + $0xb0] sm:$0xff] }
   0x9   :  { %v1008_v32 = vpack.c.bf16 %v38_v30, %v34_v29  ;;  %v988_v36 = vpack.c.bf16 %v35_v33, %v31_v31  ;;  %v40_v37 = vld [vmem:[%s1741_s0 + $0xc8] sm:$0xff]  ;;  %v42_v39 = vld [vmem:[%s1741_s0 + $0xd8] sm:$0xff]  ;;  %v1010_v40 = vpack.c.bf16 %v37_v35, %v33_v34  ;;  %v39_v43 = vld [vmem:[%s1741_s0 + $0xc0] sm:$0xff] }
   0xa   :  { %985 = vmatpush1.bf16.msra.mxu0 %v984_v23  ;;  %v44_v38 = vld [vmem:[%s1741_s0 + $0xe8] sm:$0xff]  ;;  %v46_v42 = vld [vmem:[%s1741_s0 + $0xf8] sm:$0xff]  ;;  %v43_v44 = vld [vmem:[%s1741_s0 + $0xe0] sm:$0xff] }
   0xb   :  { %1007 = vmatpush1.bf16.msra.mxu1 %v1006_v27  ;;  %987 = vmatprep.subr.bf16.mxu0 %v986_v28  ;;  %v990_v41 = vpack.c.bf16 %v44_v38, %v40_v37  ;;  %v1012_v45 = vpack.c.bf16 %v46_v42, %v42_v39  ;;  %v41_v46 = vld [vmem:[%s1741_s0 + $0xd0] sm:$0xff]  ;;  %v48_v48 = vld [vmem:[%s1741_s0 + $0x108] sm:$0xff]  ;;  %v50_v50 = vld [vmem:[%s1741_s0 + $0x118] sm:$0xff]  ;;  %v992_v51 = vpack.c.bf16 %v43_v44, %v39_v43 }
   0xc   :  { %1009 = vmatprep.subr.bf16.mxu1 %v1008_v32  ;;  %v45_v47 = vld [vmem:[%s1741_s0 + $0xf0] sm:$0xff]  ;;  %v52_v49 = vld [vmem:[%s1741_s0 + $0x128] sm:$0x7]  ;;  %vm1288_vm2 = vmpackc.low %vm59_vm0, %vm1160_vm1 }
   0xd   :  { %v54_v53 = vld [vmem:[%s1741_s0 + $0x138] sm:$0x7]  ;;  %v1014_v54 = vpack.c.bf16 %v45_v47, %v41_v46  ;;  %v994_v55 = vpack.c.bf16 %v52_v49, %v48_v48  ;;  %v47_v56 = vld [vmem:[%s1741_s0 + $0x100] sm:$0xff]  ;;  %v49_v58 = vld [vmem:[%s1741_s0 + $0x110] sm:$0xff] }
   0xe   :  { %989 = vmatpush1.bf16.msra.mxu0 %v988_v36  ;;  %v51_v57 = vld [vmem:[%s1741_s0 + $0x120] sm:$0x7]  ;;  %v1016_v59 = vpack.c.bf16 %v54_v53, %v50_v50  ;;  %v53_v60 = vld [vmem:[%s1741_s0 + $0x130] sm:$0x7]  ;;  %v841_v61 = vld [vmem:[%s1741_s0 + $0x148] sm:$0xff] }
   0xf   :  { %1011 = vmatpush1.bf16.msra.mxu1 %v1010_v40  ;;  %991 = vmatprep.subr.bf16.mxu0 %v990_v41  ;;  %v845_v62 = vld [vmem:[%s1741_s0 + $0x168] sm:$0xff]  ;;  %v843_v63 = vld [vmem:[%s1741_s0 + $0x158] sm:$0xff]  ;;  %v997_v1 = vpack.c.bf16 %v51_v57, %v47_v56  ;;  %v1019_v2 = vpack.c.bf16 %v53_v60, %v49_v58  ;;  %v840_v5 = vld [vmem:[%s1741_s0 + $0x140] sm:$0xff] }
  0x10   :  { %1013 = vmatprep.subr.bf16.mxu1 %v1012_v45  ;;  %v847_v0 = vld [vmem:[%s1741_s0 + $0x178] sm:$0xff]  ;;  %v1022_v4 = vpack.c.bf16 %v845_v62, %v841_v61  ;;  %v844_v6 = vld [vmem:[%s1741_s0 + $0x160] sm:$0xff]  ;;  %v842_v7 = vld [vmem:[%s1741_s0 + $0x150] sm:$0xff] }
  0x11   :  { %v1044_v8 = vpack.c.bf16 %v847_v0, %v843_v63  ;;  %v846_v9 = vld [vmem:[%s1741_s0 + $0x170] sm:$0xff]  ;;  %v849_v10 = vld [vmem:[%s1741_s0 + $0x188] sm:$0xff]  ;;  %v851_v12 = vld [vmem:[%s1741_s0 + $0x198] sm:$0xff]  ;;  %v1024_v15 = vpack.c.bf16 %v844_v6, %v840_v5 }
  0x12   :  { %993 = vmatpush1.bf16.msra.mxu0 %v992_v51  ;;  %v853_v11 = vld [vmem:[%s1741_s0 + $0x1a8] sm:$0xff]  ;;  %v855_v13 = vld [vmem:[%s1741_s0 + $0x1b8] sm:$0xff]  ;;  %v1352_v14 = vld [vmem:[%s1742_s1] sm:$0x3f]  ;;  %v1046_v16 = vpack.c.bf16 %v846_v9, %v842_v7 }
  0x13   :  { %1015 = vmatpush1.bf16.msra.mxu1 %v1014_v54  ;;  %996 = vmatprep.subr.msk.bf16.mxu0 %vm1288_vm2, %v994_v55  ;;  %v1026_v17 = vpack.c.bf16 %v853_v11, %v849_v10  ;;  %v848_v18 = vld [vmem:[%s1741_s0 + $0x180] sm:$0xff]  ;;  %v850_v20 = vld [vmem:[%s1741_s0 + $0x190] sm:$0xff]  ;;  %v1048_v21 = vpack.c.bf16 %v855_v13, %v851_v12  ;;  %v857_v23 = vld [vmem:[%s1741_s0 + $0x1c8] sm:$0xff] }
  0x14   :  { %1018 = vmatprep.subr.msk.bf16.mxu1 %vm1288_vm2, %v1016_v59  ;;  %v852_v19 = vld [vmem:[%s1741_s0 + $0x1a0] sm:$0xff]  ;;  %v854_v22 = vld [vmem:[%s1741_s0 + $0x1b0] sm:$0xff]  ;;  %v861_v24 = vld [vmem:[%s1741_s0 + $0x1e8] sm:$0xff] }
  0x15   :  { %v859_v25 = vld [vmem:[%s1741_s0 + $0x1d8] sm:$0xff]  ;;  %v1028_v27 = vpack.c.bf16 %v852_v19, %v848_v18  ;;  %v1050_v28 = vpack.c.bf16 %v854_v22, %v850_v20  ;;  %v1030_v29 = vpack.c.bf16 %v861_v24, %v857_v23  ;;  %v856_v30 = vld [vmem:[%s1741_s0 + $0x1c0] sm:$0xff]  ;;  %v858_v32 = vld [vmem:[%s1741_s0 + $0x1d0] sm:$0xff] }
  0x16   :  { %999 = vmatpush1.bf16.msk.msra.mxu0 %vm1288_vm2, %v997_v1  ;;  %v863_v26 = vld [vmem:[%s1741_s0 + $0x1f8] sm:$0xff]  ;;  %v860_v31 = vld [vmem:[%s1741_s0 + $0x1e0] sm:$0xff]  ;;  %v862_v34 = vld [vmem:[%s1741_s0 + $0x1f0] sm:$0xff] }
  0x17   :  { %1021 = vmatpush1.bf16.msk.msra.mxu1 %vm1288_vm2, %v1019_v2  ;;  %1023 = vmatprep.subr.bf16.mxu0 %v1022_v4  ;;  %v1052_v33 = vpack.c.bf16 %v863_v26, %v859_v25  ;;  %v865_v35 = vld [vmem:[%s1741_s0 + $0x208] sm:$0xff]  ;;  %v867_v37 = vld [vmem:[%s1741_s0 + $0x218] sm:$0xff]  ;;  %v1032_v39 = vpack.c.bf16 %v860_v31, %v856_v30  ;;  %v1054_v40 = vpack.c.bf16 %v862_v34, %v858_v32  ;;  %v864_v42 = vld [vmem:[%s1741_s0 + $0x200] sm:$0xff] }
  0x18   :  { %1045 = vmatprep.subr.bf16.mxu1 %v1044_v8  ;;  %v869_v36 = vld [vmem:[%s1741_s0 + $0x228] sm:$0xff]  ;;  %v871_v38 = vld [vmem:[%s1741_s0 + $0x238] sm:$0xff]  ;;  %v868_v43 = vld [vmem:[%s1741_s0 + $0x220] sm:$0xff] }
  0x19   :  { %836 = vmatmul.mubr.msk.f32.vlgmr.msra.gmra.mrb[0].mxu0 %vm55_vm3, %v1352_v14  ;;  %v1034_v41 = vpack.c.bf16 %v869_v36, %v865_v35  ;;  %v866_v44 = vld [vmem:[%s1741_s0 + $0x210] sm:$0xff]  ;;  %v1056_v45 = vpack.c.bf16 %v871_v38, %v867_v37  ;;  %v873_v47 = vld [vmem:[%s1741_s0 + $0x248] sm:$0xff]  ;;  %v875_v49 = vld [vmem:[%s1741_s0 + $0x258] sm:$0xff]  ;;  %v1036_v51 = vpack.c.bf16 %v868_v43, %v864_v42 }
  0x1a   :  { %839 = vmatmul.mubr.msk.f32.vlgmr.msra.gmra.mrb[0].mxu1 %vm55_vm3, %v1352_v14  ;;  %1025 = vmatpush1.bf16.msra.mxu0 %v1024_v15  ;;  %v870_v46 = vld [vmem:[%s1741_s0 + $0x230] sm:$0xff]  ;;  %v877_v48 = vld [vmem:[%s1741_s0 + $0x268] sm:$0x7]  ;;  %v879_v50 = vld [vmem:[%s1741_s0 + $0x278] sm:$0x7] }
  0x1b   :  { %1047 = vmatpush1.bf16.msra.mxu1 %v1046_v16  ;;  %1027 = vmatprep.subr.bf16.mxu0 %v1026_v17  ;;  %v1058_v53 = vpack.c.bf16 %v870_v46, %v866_v44  ;;  %v1038_v54 = vpack.c.bf16 %v877_v48, %v873_v47  ;;  %v872_v55 = vld [vmem:[%s1741_s0 + $0x240] sm:$0xff]  ;;  %v874_v57 = vld [vmem:[%s1741_s0 + $0x250] sm:$0xff]  ;;  %v1060_v58 = vpack.c.bf16 %v879_v50, %v875_v49  ;;  %v887_v60 = vld [vmem:[%s1741_s0 + $0x288] sm:$0xff] }
  0x1c   :  { %1049 = vmatprep.subr.bf16.mxu1 %v1048_v21  ;;  %331 = vmatprep.mubr.f32.mxu0 %v1158_v3  ;;  %v876_v56 = vld [vmem:[%s1741_s0 + $0x260] sm:$0x7]  ;;  %v878_v59 = vld [vmem:[%s1741_s0 + $0x270] sm:$0x7]  ;;  %v891_v61 = vld [vmem:[%s1741_s0 + $0x2a8] sm:$0xff] }
  0x1d   :  { %402 = vmatprep.mubr.f32.mxu1 %v1158_v3  ;;  %v889_v62 = vld [vmem:[%s1741_s0 + $0x298] sm:$0xff]  ;;  %v1041_v0 = vpack.c.bf16 %v876_v56, %v872_v55  ;;  %v1063_v1 = vpack.c.bf16 %v878_v59, %v874_v57  ;;  %v1066_v2 = vpack.c.bf16 %v891_v61, %v887_v60  ;;  %v886_v4 = vld [vmem:[%s1741_s0 + $0x280] sm:$0xff]  ;;  %v888_v6 = vld [vmem:[%s1741_s0 + $0x290] sm:$0xff] }
  0x1e   :  { %1029 = vmatpush1.bf16.msra.mxu0 %v1028_v27  ;;  %v893_v63 = vld [vmem:[%s1741_s0 + $0x2b8] sm:$0xff]  ;;  %v890_v5 = vld [vmem:[%s1741_s0 + $0x2a0] sm:$0xff]  ;;  %v892_v8 = vld [vmem:[%s1741_s0 + $0x2b0] sm:$0xff] }
  0x1f   :  { %1051 = vmatpush1.bf16.msra.mxu1 %v1050_v28  ;;  %1031 = vmatprep.subr.bf16.mxu0 %v1030_v29  ;;  %v1088_v7 = vpack.c.bf16 %v893_v63, %v889_v62  ;;  %v895_v9 = vld [vmem:[%s1741_s0 + $0x2c8] sm:$0xff]  ;;  %v897_v11 = vld [vmem:[%s1741_s0 + $0x2d8] sm:$0xff]  ;;  %v1068_v13 = vpack.c.bf16 %v890_v5, %v886_v4  ;;  %v1090_v15 = vpack.c.bf16 %v892_v8, %v888_v6  ;;  %v894_v17 = vld [vmem:[%s1741_s0 + $0x2c0] sm:$0xff] }
  0x20   :  { %1053 = vmatprep.subr.bf16.mxu1 %v1052_v33  ;;  %v899_v10 = vld [vmem:[%s1741_s0 + $0x2e8] sm:$0xff]  ;;  %v901_v12 = vld [vmem:[%s1741_s0 + $0x2f8] sm:$0xff]  ;;  %v898_v18 = vld [vmem:[%s1741_s0 + $0x2e0] sm:$0xff] }
  0x21   :  { %v1070_v16 = vpack.c.bf16 %v899_v10, %v895_v9  ;;  %v896_v19 = vld [vmem:[%s1741_s0 + $0x2d0] sm:$0xff]  ;;  %v1092_v20 = vpack.c.bf16 %v901_v12, %v897_v11  ;;  %v903_v22 = vld [vmem:[%s1741_s0 + $0x308] sm:$0xff]  ;;  %v905_v24 = vld [vmem:[%s1741_s0 + $0x318] sm:$0xff]  ;;  %v1072_v26 = vpack.c.bf16 %v898_v18, %v894_v17 }
  0x22   :  { %1033 = vmatpush1.bf16.msra.mxu0 %v1032_v39  ;;  %v900_v21 = vld [vmem:[%s1741_s0 + $0x2f0] sm:$0xff]  ;;  %v907_v23 = vld [vmem:[%s1741_s0 + $0x328] sm:$0xff]  ;;  %v909_v25 = vld [vmem:[%s1741_s0 + $0x338] sm:$0xff] }
  0x23   :  { %1055 = vmatpush1.bf16.msra.mxu1 %v1054_v40  ;;  %1035 = vmatprep.subr.bf16.mxu0 %v1034_v41  ;;  %v1094_v27 = vpack.c.bf16 %v900_v21, %v896_v19  ;;  %v1074_v28 = vpack.c.bf16 %v907_v23, %v903_v22  ;;  %v902_v29 = vld [vmem:[%s1741_s0 + $0x300] sm:$0xff]  ;;  %v904_v31 = vld [vmem:[%s1741_s0 + $0x310] sm:$0xff]  ;;  %v1096_v32 = vpack.c.bf16 %v909_v25, %v905_v24  ;;  %v911_v34 = vld [vmem:[%s1741_s0 + $0x348] sm:$0xff] }
  0x24   :  { %1057 = vmatprep.subr.bf16.mxu1 %v1056_v45  ;;  %v906_v30 = vld [vmem:[%s1741_s0 + $0x320] sm:$0xff]  ;;  %v908_v33 = vld [vmem:[%s1741_s0 + $0x330] sm:$0xff]  ;;  %v915_v35 = vld [vmem:[%s1741_s0 + $0x368] sm:$0xff] }
  0x25   :  { %v913_v36 = vld [vmem:[%s1741_s0 + $0x358] sm:$0xff]  ;;  %v1076_v38 = vpack.c.bf16 %v906_v30, %v902_v29  ;;  %v1098_v39 = vpack.c.bf16 %v908_v33, %v904_v31  ;;  %v1078_v40 = vpack.c.bf16 %v915_v35, %v911_v34  ;;  %v910_v41 = vld [vmem:[%s1741_s0 + $0x340] sm:$0xff]  ;;  %v912_v43 = vld [vmem:[%s1741_s0 + $0x350] sm:$0xff] }
  0x26   :  { %1037 = vmatpush1.bf16.msra.mxu0 %v1036_v51  ;;  %v917_v37 = vld [vmem:[%s1741_s0 + $0x378] sm:$0xff]  ;;  %v914_v42 = vld [vmem:[%s1741_s0 + $0x360] sm:$0xff]  ;;  %v916_v45 = vld [vmem:[%s1741_s0 + $0x370] sm:$0xff] }
  0x27   :  { %1059 = vmatpush1.bf16.msra.mxu1 %v1058_v53  ;;  %1040 = vmatprep.subr.msk.bf16.mxu0 %vm1288_vm2, %v1038_v54  ;;  %v1100_v44 = vpack.c.bf16 %v917_v37, %v913_v36  ;;  %v919_v46 = vld [vmem:[%s1741_s0 + $0x388] sm:$0xff]  ;;  %v921_v48 = vld [vmem:[%s1741_s0 + $0x398] sm:$0xff]  ;;  %v1080_v50 = vpack.c.bf16 %v914_v42, %v910_v41  ;;  %v918_v51 = vld [vmem:[%s1741_s0 + $0x380] sm:$0xff]  ;;  %v1102_v53 = vpack.c.bf16 %v916_v45, %v912_v43 }
  0x28   :  { %1062 = vmatprep.subr.msk.bf16.mxu1 %vm1288_vm2, %v1060_v58  ;;  %v923_v47 = vld [vmem:[%s1741_s0 + $0x3a8] sm:$0x7]  ;;  %v925_v49 = vld [vmem:[%s1741_s0 + $0x3b8] sm:$0x7]  ;;  %v922_v55 = vld [vmem:[%s1741_s0 + $0x3a0] sm:$0x7] }
  0x29   :  { %v1082_v54 = vpack.c.bf16 %v923_v47, %v919_v46  ;;  %v920_v56 = vld [vmem:[%s1741_s0 + $0x390] sm:$0xff]  ;;  %v1104_v58 = vpack.c.bf16 %v925_v49, %v921_v48  ;;  %v933_v59 = vld [vmem:[%s1741_s0 + $0x3c8] sm:$0xff]  ;;  %v811_v61 = vld [vmem:[%s1743_s2] sm:$0x3f] }
  0x2a   :  { %1043 = vmatpush1.bf16.msk.msra.mxu0 %vm1288_vm2, %v1041_v0  ;;  %v924_v57 = vld [vmem:[%s1741_s0 + $0x3b0] sm:$0x7]  ;;  %v937_v60 = vld [vmem:[%s1741_s0 + $0x3e8] sm:$0xff]  ;;  %v935_v62 = vld [vmem:[%s1741_s0 + $0x3d8] sm:$0xff]  ;;  %814 = vperm.xlu0 %1157, %v811_v61   ;;  %v1085_v0 = vpack.c.bf16 %v922_v55, %v918_v51 }
  0x2b   :  { %1065 = vmatpush1.bf16.msk.msra.mxu1 %vm1288_vm2, %v1063_v1  ;;  %1067 = vmatprep.subr.bf16.mxu0 %v1066_v2  ;;  %v939_v63 = vld [vmem:[%s1741_s0 + $0x3f8] sm:$0xff]  ;;  %v1107_v1 = vpack.c.bf16 %v924_v57, %v920_v56  ;;  %v1110_v2 = vpack.c.bf16 %v937_v60, %v933_v59  ;;  %v932_v4 = vld [vmem:[%s1741_s0 + $0x3c0] sm:$0xff]  ;;  %v934_v6 = vld [vmem:[%s1741_s0 + $0x3d0] sm:$0xff] }
  0x2c   :  { %1089 = vmatprep.subr.bf16.mxu1 %v1088_v7  ;;  %v936_v5 = vld [vmem:[%s1741_s0 + $0x3e0] sm:$0xff]  ;;  %v1132_v7 = vpack.c.bf16 %v939_v63, %v935_v62  ;;  %v938_v8 = vld [vmem:[%s1741_s0 + $0x3f0] sm:$0xff]  ;;  %v941_v9 = vld [vmem:[%s1741_s0 + $0x408] sm:$0xff] }
  0x2d   :  { %882 = vmatmul.mubr.msk.f32.vlgmr.msra.gmra.mrb[2].mxu0 %vm55_vm3, %v1352_v14  ;;  %v945_v10 = vld [vmem:[%s1741_s0 + $0x428] sm:$0xff]  ;;  %v943_v11 = vld [vmem:[%s1741_s0 + $0x418] sm:$0xff]  ;;  %v940_v17 = vld [vmem:[%s1741_s0 + $0x400] sm:$0xff] }
  0x2e   :  { %885 = vmatmul.mubr.msk.f32.vlgmr.msra.gmra.mrb[2].mxu1 %vm55_vm3, %v1352_v14  ;;  %1069 = vmatpush1.bf16.msra.mxu0 %v1068_v13  ;;  %v947_v12 = vld [vmem:[%s1741_s0 + $0x438] sm:$0xff]  ;;  %v1112_v13 = vpack.c.bf16 %v936_v5, %v932_v4  ;;  %v944_v18 = vld [vmem:[%s1741_s0 + $0x420] sm:$0xff]  ;;  %v942_v19 = vld [vmem:[%s1741_s0 + $0x410] sm:$0xff] }
  0x2f   :  { %1091 = vmatpush1.bf16.msra.mxu1 %v1090_v15  ;;  %1071 = vmatprep.subr.bf16.mxu0 %v1070_v16  ;;  %v1134_v15 = vpack.c.bf16 %v938_v8, %v934_v6  ;;  %v1114_v16 = vpack.c.bf16 %v945_v10, %v941_v9  ;;  %v946_v21 = vld [vmem:[%s1741_s0 + $0x430] sm:$0xff]  ;;  %v949_v22 = vld [vmem:[%s1741_s0 + $0x448] sm:$0xff]  ;;  %v951_v24 = vld [vmem:[%s1741_s0 + $0x458] sm:$0xff] }
  0x30   :  { %1093 = vmatprep.subr.bf16.mxu1 %v1092_v20  ;;  %526 = vmatprep.mubr.f32.mxu0 %v1158_v3  ;;  %v1136_v20 = vpack.c.bf16 %v947_v12, %v943_v11  ;;  %v953_v23 = vld [vmem:[%s1741_s0 + $0x468] sm:$0xff]  ;;  %v955_v25 = vld [vmem:[%s1741_s0 + $0x478] sm:$0xff]  ;;  %v948_v29 = vld [vmem:[%s1741_s0 + $0x440] sm:$0xff] }
  0x31   :  { %597 = vmatprep.mubr.f32.mxu1 %v1158_v3  ;;  %v952_v30 = vld [vmem:[%s1741_s0 + $0x460] sm:$0xff]  ;;  %v950_v31 = vld [vmem:[%s1741_s0 + $0x450] sm:$0xff]  ;;  %v957_v34 = vld [vmem:[%s1741_s0 + $0x488] sm:$0xff] }
  0x32   :  { %1073 = vmatpush1.bf16.msra.mxu0 %v1072_v26  ;;  %v1116_v26 = vpack.c.bf16 %v944_v18, %v940_v17  ;;  %v954_v33 = vld [vmem:[%s1741_s0 + $0x470] sm:$0xff]  ;;  %v961_v35 = vld [vmem:[%s1741_s0 + $0x4a8] sm:$0xff]  ;;  %v959_v36 = vld [vmem:[%s1741_s0 + $0x498] sm:$0xff] }
  0x33   :  { %1095 = vmatpush1.bf16.msra.mxu1 %v1094_v27  ;;  %1075 = vmatprep.subr.bf16.mxu0 %v1074_v28  ;;  %v1138_v27 = vpack.c.bf16 %v946_v21, %v942_v19  ;;  %v1118_v28 = vpack.c.bf16 %v953_v23, %v949_v22  ;;  %v963_v37 = vld [vmem:[%s1741_s0 + $0x4b8] sm:$0xff]  ;;  %v956_v41 = vld [vmem:[%s1741_s0 + $0x480] sm:$0xff]  ;;  %v958_v43 = vld [vmem:[%s1741_s0 + $0x490] sm:$0xff] }
  0x34   :  { %1097 = vmatprep.subr.bf16.mxu1 %v1096_v32  ;;  %v1140_v32 = vpack.c.bf16 %v955_v25, %v951_v24  ;;  %v960_v42 = vld [vmem:[%s1741_s0 + $0x4a0] sm:$0xff]  ;;  %v965_v45 = vld [vmem:[%s1741_s0 + $0x4c8] sm:$0xff]  ;;  %v967_v47 = vld [vmem:[%s1741_s0 + $0x4d8] sm:$0xff] }
  0x35   :  { %v969_v46 = vld [vmem:[%s1741_s0 + $0x4e8] sm:$0x7]  ;;  %v971_v48 = vld [vmem:[%s1741_s0 + $0x4f8] sm:$0x7]  ;;  %v1124_v49 = vpack.c.bf16 %v960_v42, %v956_v41  ;;  %v966_v56 = vld [vmem:[%s1741_s0 + $0x4d0] sm:$0xff] }
  0x36   :  { %1077 = vmatpush1.bf16.msra.mxu0 %v1076_v38  ;;  %v1120_v38 = vpack.c.bf16 %v952_v30, %v948_v29  ;;  %v1126_v51 = vpack.c.bf16 %v969_v46, %v965_v45  ;;  %v1148_v55 = vpack.c.bf16 %v971_v48, %v967_v47  ;;  %v970_v57 = vld [vmem:[%s1741_s0 + $0x4f0] sm:$0x7] }
  0x37   :  { %1099 = vmatpush1.bf16.msra.mxu1 %v1098_v39  ;;  %1079 = vmatprep.subr.bf16.mxu0 %v1078_v40  ;;  %v1142_v39 = vpack.c.bf16 %v954_v33, %v950_v31  ;;  %v1122_v40 = vpack.c.bf16 %v961_v35, %v957_v34  ;;  %v1151_v59 = vpack.c.bf16 %v970_v57, %v966_v56 }
  0x38   :  { %1101 = vmatprep.subr.bf16.mxu1 %v1100_v44  ;;  %v962_v44 = vld [vmem:[%s1741_s0 + $0x4b0] sm:$0xff] }
  0x3a   :  { %1081 = vmatpush1.bf16.msra.mxu0 %v1080_v50  ;;  %v1146_v50 = vpack.c.bf16 %v962_v44, %v958_v43 }
  0x3b   :  { %1103 = vmatpush1.bf16.msra.mxu1 %v1102_v53  ;;  %1084 = vmatprep.subr.msk.bf16.mxu0 %vm1288_vm2, %v1082_v54  ;;  %v964_v53 = vld [vmem:[%s1741_s0 + $0x4c0] sm:$0xff] }
  0x3c   :  { %1106 = vmatprep.subr.msk.bf16.mxu1 %vm1288_vm2, %v1104_v58  ;;  %v968_v54 = vld [vmem:[%s1741_s0 + $0x4e0] sm:$0x7] }
  0x3d   :  { %v1129_v58 = vpack.c.bf16 %v968_v54, %v964_v53 }
  0x3e   :  { %1087 = vmatpush1.bf16.msk.msra.mxu0 %vm1288_vm2, %v1085_v0 }
  0x3f   :  { %1109 = vmatpush1.bf16.msk.msra.mxu1 %vm1288_vm2, %v1107_v1  ;;  %1111 = vmatprep.subr.bf16.mxu0 %v1110_v2 }
  0x40   :  { %1133 = vmatprep.subr.bf16.mxu1 %v1132_v7 }
  0x41   :  { %928 = vmatmul.mubr.msk.f32.vlgmr.msra.gmra.mrb[4].mxu0 %vm55_vm3, %v1352_v14 }
  0x42   :  { %931 = vmatmul.mubr.msk.f32.vlgmr.msra.gmra.mrb[4].mxu1 %vm55_vm3, %v1352_v14  ;;  %1113 = vmatpush1.bf16.msra.mxu0 %v1112_v13 }
  0x43   :  { %1135 = vmatpush1.bf16.msra.mxu1 %v1134_v15  ;;  %1115 = vmatprep.subr.bf16.mxu0 %v1114_v16 }
  0x44   :  { %1137 = vmatprep.subr.bf16.mxu1 %v1136_v20  ;;  %721 = vmatprep.mubr.f32.mxu0 %v1158_v3 }
  0x45   :  { %792 = vmatprep.mubr.f32.mxu1 %v1158_v3  ;;  %v1144_v3 = vpack.c.bf16 %v963_v37, %v959_v36 }
  0x46   :  { %1117 = vmatpush1.bf16.msra.mxu0 %v1116_v26 }
  0x47   :  { %1139 = vmatpush1.bf16.msra.mxu1 %v1138_v27  ;;  %1119 = vmatprep.subr.bf16.mxu0 %v1118_v28 }
  0x48   :  { %1141 = vmatprep.subr.bf16.mxu1 %v1140_v32 }
  0x4a   :  { %1121 = vmatpush1.bf16.msra.mxu0 %v1120_v38 }
  0x4b   :  { %1143 = vmatpush1.bf16.msra.mxu1 %v1142_v39  ;;  %1123 = vmatprep.subr.bf16.mxu0 %v1122_v40 }
  0x4c   :  { %1145 = vmatprep.subr.bf16.mxu1 %v1144_v3 }
  0x4e   :  { %1125 = vmatpush1.bf16.msra.mxu0 %v1124_v49 }
  0x4f   :  { %1147 = vmatpush1.bf16.msra.mxu1 %v1146_v50  ;;  %1128 = vmatprep.subr.msk.bf16.mxu0 %vm1288_vm2, %v1126_v51 }
  0x50   :  { %1150 = vmatprep.subr.msk.bf16.mxu1 %vm1288_vm2, %v1148_v55 }
  0x52   :  { %1131 = vmatpush1.bf16.msk.msra.mxu0 %vm1288_vm2, %v1129_v58 }
  0x53   :  { %1153 = vmatpush1.bf16.msk.msra.mxu1 %vm1288_vm2, %v1151_v59 }
  0x55   :  { %974 = vmatmul.mubr.msk.f32.vlgmr.msra.gmra.mrb[6].mxu0 %vm55_vm3, %v1352_v14 }
  0x56   :  { %977 = vmatmul.mubr.msk.f32.vlgmr.msra.gmra.mrb[6].mxu1 %vm55_vm3, %v1352_v14 }
  0xa9   :  { %v815_v19 = vpop.permute.xlu0 %814 }
  0xec   :  { %v138_v60 = vpop.f32.mrb[0].mxu0 }
  0xed   :  { %v209_v61 = vpop.f32.mrb[0].mxu1  ;;  %v140_v62 = vpop.f32.mrb[1].mxu0 }
  0xee   :  { %v211_v63 = vpop.f32.mrb[1].mxu1 }
 0x100   :  { %v333_v0 = vpop.f32.mrb[2].mxu0 }
 0x101   :  { %v799_v1 = vmax.f32 %v138_v60, %v333_v0  ;;  %v404_v2 = vpop.f32.mrb[2].mxu1  ;;  %v335_v4 = vpop.f32.mrb[3].mxu0 }
 0x102   :  { %v801_v5 = vmax.f32 %v209_v61, %v404_v2  ;;  %v800_v6 = vmax.f32 %v140_v62, %v335_v4  ;;  %v406_v7 = vpop.f32.mrb[3].mxu1 }
 0x103   :  { %v802_v8 = vmax.f32 %v211_v63, %v406_v7 }
 0x114   :  { %v528_v52 = vpop.f32.mrb[4].mxu0 }
 0x115   :  { %v599_v9 = vpop.f32.mrb[4].mxu1  ;;  %v530_v10 = vpop.f32.mrb[5].mxu0 }
 0x116   :  { %v601_v11 = vpop.f32.mrb[5].mxu1 }
 0x128   :  { %v723_v12 = vpop.f32.mrb[6].mxu0 }
 0x129   :  { %v803_v13 = vmax.f32 %v528_v52, %v723_v12  ;;  %v794_v15 = vpop.f32.mrb[6].mxu1  ;;  %v725_v14 = vpop.f32.mrb[7].mxu0 }
 0x12a   :  { %v805_v16 = vmax.f32 %v599_v9, %v794_v15  ;;  %v804_v17 = vmax.f32 %v530_v10, %v725_v14  ;;  %v796_v18 = vpop.f32.mrb[7].mxu1 }
 0x12b   :  { %v807_v20 = vmax.f32 %v799_v1, %v803_v13  ;;  %v806_v21 = vmax.f32 %v601_v11, %v796_v18 }
 0x12c   :  { %v809_v22 = vmax.f32 %v801_v5, %v805_v16  ;;  %v808_v23 = vmax.f32 %v800_v6, %v804_v17 }
 0x12d   :  { %v810_v24 = vmax.f32 %v802_v8, %v806_v21  ;;  %v817_v25 = vadd.f32 %v815_v19, %v807_v20 }
 0x12e   :  { %v818_v26 = vadd.f32 %v815_v19, %v808_v23  ;;  %v819_v27 = vadd.f32 %v815_v19, %v809_v22 }
 0x12f   :  { %v820_v28 = vadd.f32 %v815_v19, %v810_v24  ;;  %v821_v29 = vmax.f32 %v817_v25, 0.0 }
 0x130   :  { %v822_v30 = vmax.f32 %v818_v26, 0.0  ;;  %v823_v31 = vmax.f32 %v819_v27, 0.0 }
 0x131   :  { %v824_v32 = vmax.f32 %v820_v28, 0.0  ;;  %825 = vst [vmem:[%s1744_s3] sm:$0x3f] %v821_v29 }
 0x132   :  { %826 = vst [vmem:[%s1744_s3 + $0x8] sm:$0x3f] %v822_v30  ;;  %827 = vst [vmem:[%s1744_s3 + $0x10] sm:$0x3f] %v823_v31 }
 0x133   :  { %829 = vst.msk [vmem:[%s1744_s3 + $0x18] sm:$0x3f] %vm828_vm4, %v824_v32 }

// kernel: net_forward.4
= control target key start
LH: loop header
LB: loop body
LE: loop exit
PB: predicated region body
PF: predicated region fallthrough
CT: control target
= control target key end

     0   :  { %v627_v0 = vmov 0.0|0.0   ;;  %v628_v8 = vmov 0   ;;  %vm37_vm0 = vcmask 179200   ;;  %v629_v61 = vmov 0.0   ;;  %s978_s0 = inlined_call_operand.vmem [shape: f32[4,150,50], index: 0, kind: input, shape index: {}]   ;;  %s979_s1 = inlined_call_operand.vmem [shape: f32[16,150], index: 1, kind: input, shape index: {}]   ;;  %s980_s2 = inlined_call_operand.vmem [shape: f32[16,1], index: 2, kind: input, shape index: {}]   ;;  %s981_s3 = inlined_call_operand.vmem [shape: f32[16,50], index: 3, kind: output, shape index: {}]  }
   0x1   :  { %515 = vmatprep.subr.bf16.mxu0 %v627_v0  ;;  %542 = vmatprep.subr.bf16.mxu1 %v627_v0  ;;  %v18_v1 = vld [vmem:[%s978_s0] sm:$0xff]  ;;  %v19_v2 = vld [vmem:[%s978_s0 + $0x8] sm:$0xff]  ;;  %v449_v3 = vld [vmem:[%s978_s0 + $0x98] sm:$0xff]  ;;  %vm44_vm1 = vcmask 1045504   ;;  %vm439_vm2 = vcmask 408576  }
   0x2   :  { %v516_v4 = vpack.c.bf16 %v19_v2, %v18_v1  ;;  %v450_v5 = vld [vmem:[%s978_s0 + $0xa0] sm:$0xff]  ;;  %v20_v6 = vld [vmem:[%s978_s0 + $0x10] sm:$0xff]  ;;  %v21_v7 = vld [vmem:[%s978_s0 + $0x18] sm:$0xff]  ;;  %626 = vset.pattern.permute.xlu0 %v628_v8 }
   0x3   :  { %v543_v9 = vpack.c.bf16 %v450_v5, %v449_v3  ;;  %v451_v10 = vld [vmem:[%s978_s0 + $0xa8] sm:$0xff]  ;;  %v452_v11 = vld [vmem:[%s978_s0 + $0xb0] sm:$0xff]  ;;  %v519_v12 = vpack.c.bf16 %v21_v7, %v20_v6  ;;  %v22_v14 = vld [vmem:[%s978_s0 + $0x20] sm:$0xff] }
   0x4   :  { %517 = vmatpush1.bf16.msra.mxu0 %v516_v4  ;;  %v546_v13 = vpack.c.bf16 %v452_v11, %v451_v10  ;;  %v23_v15 = vld [vmem:[%s978_s0 + $0x28] sm:$0xff]  ;;  %v453_v16 = vld [vmem:[%s978_s0 + $0xb8] sm:$0xff]  ;;  %v454_v17 = vld [vmem:[%s978_s0 + $0xc0] sm:$0xff] }
   0x5   :  { %544 = vmatpush1.bf16.msra.mxu1 %v543_v9  ;;  %518 = vmatprep.subr.bf16.mxu0 %v627_v0  ;;  %v522_v18 = vpack.c.bf16 %v23_v15, %v22_v14  ;;  %v549_v19 = vpack.c.bf16 %v454_v17, %v453_v16  ;;  %v24_v20 = vld [vmem:[%s978_s0 + $0x30] sm:$0xff]  ;;  %v25_v21 = vld [vmem:[%s978_s0 + $0x38] sm:$0xff]  ;;  %v455_v22 = vld [vmem:[%s978_s0 + $0xc8] sm:$0xff] }
   0x6   :  { %545 = vmatprep.subr.bf16.mxu1 %v627_v0  ;;  %v456_v23 = vld [vmem:[%s978_s0 + $0xd0] sm:$0xff]  ;;  %v525_v24 = vpack.c.bf16 %v25_v21, %v24_v20  ;;  %v26_v26 = vld [vmem:[%s978_s0 + $0x40] sm:$0xff]  ;;  %v27_v27 = vld [vmem:[%s978_s0 + $0x48] sm:$0xff] }
   0x7   :  { %v552_v25 = vpack.c.bf16 %v456_v23, %v455_v22  ;;  %v714_v28 = vld [vmem:[%s979_s1 + $0x8] sm:$0xff]  ;;  %v457_v29 = vld [vmem:[%s978_s0 + $0xd8] sm:$0xff]  ;;  %v458_v30 = vld [vmem:[%s978_s0 + $0xe0] sm:$0xff]  ;;  %v528_v31 = vpack.c.bf16 %v27_v27, %v26_v26 }
   0x8   :  { %520 = vmatpush1.bf16.msra.mxu0 %v519_v12  ;;  %447 = vmatprep.mubr.msk.f32.mxu0 %vm37_vm0, %v714_v28  ;;  %v555_v32 = vpack.c.bf16 %v458_v30, %v457_v29  ;;  %v28_v33 = vld [vmem:[%s978_s0 + $0x50] sm:$0xff]  ;;  %v29_v34 = vld [vmem:[%s978_s0 + $0x58] sm:$0xff]  ;;  %v459_v35 = vld [vmem:[%s978_s0 + $0xe8] sm:$0xff] }
   0x9   :  { %547 = vmatpush1.bf16.msra.mxu1 %v546_v13  ;;  %521 = vmatprep.subr.bf16.mxu0 %v627_v0  ;;  %v460_v36 = vld [vmem:[%s978_s0 + $0xf0] sm:$0xff]  ;;  %v531_v37 = vpack.c.bf16 %v29_v34, %v28_v33  ;;  %v30_v39 = vld [vmem:[%s978_s0 + $0x60] sm:$0xff]  ;;  %v31_v40 = vld [vmem:[%s978_s0 + $0x68] sm:$0xff] }
   0xa   :  { %548 = vmatprep.subr.bf16.mxu1 %v627_v0  ;;  %469 = vmatprep.mubr.msk.f32.mxu1 %vm37_vm0, %v714_v28  ;;  %v558_v38 = vpack.c.bf16 %v460_v36, %v459_v35  ;;  %v461_v41 = vld [vmem:[%s978_s0 + $0xf8] sm:$0xff]  ;;  %v462_v42 = vld [vmem:[%s978_s0 + $0x100] sm:$0xff]  ;;  %v534_v43 = vpack.c.bf16 %v31_v40, %v30_v39  ;;  %v32_v45 = vld [vmem:[%s978_s0 + $0x70] sm:$0xff] }
   0xb   :  { %v561_v44 = vpack.c.bf16 %v462_v42, %v461_v41  ;;  %v33_v46 = vld [vmem:[%s978_s0 + $0x78] sm:$0xff]  ;;  %v463_v47 = vld [vmem:[%s978_s0 + $0x108] sm:$0xff]  ;;  %v464_v48 = vld [vmem:[%s978_s0 + $0x110] sm:$0xff] }
   0xc   :  { %523 = vmatpush1.bf16.msra.mxu0 %v522_v18  ;;  %v423_v49 = vld [vmem:[%s980_s2] sm:$0xff]  ;;  %v537_v50 = vpack.c.bf16 %v33_v46, %v32_v45  ;;  %v564_v51 = vpack.c.bf16 %v464_v48, %v463_v47  ;;  %v35_v53 = vld [vmem:[%s978_s0 + $0x88] sm:$0xff]  ;;  %v465_v55 = vld [vmem:[%s978_s0 + $0x118] sm:$0xff] }
   0xd   :  { %550 = vmatpush1.bf16.msra.mxu1 %v549_v19  ;;  %524 = vmatprep.subr.bf16.mxu0 %v627_v0  ;;  %v34_v52 = vld [vmem:[%s978_s0 + $0x80] sm:$0xff]  ;;  %v424_v54 = vld [vmem:[%s980_s2 + $0x8] sm:$0xff]  ;;  %v471_v59 = vld [vmem:[%s978_s0 + $0x130] sm:$0xff] }
   0xe   :  { %551 = vmatprep.subr.bf16.mxu1 %v627_v0  ;;  %427 = vperm.xlu0 %626, %v423_v49   ;;  %v466_v56 = vld [vmem:[%s978_s0 + $0x120] sm:$0xff]  ;;  %v540_v57 = vpack.c.bf16 %v35_v53, %v34_v52  ;;  %v472_v60 = vld [vmem:[%s978_s0 + $0x138] sm:$0xff]  ;;  %v36_v62 = vld [vmem:[%s978_s0 + $0x90] sm:$0x3f] }
   0xf   :  { %v567_v58 = vpack.c.bf16 %v466_v56, %v465_v55  ;;  %v493_v63 = vld [vmem:[%s978_s0 + $0x1c8] sm:$0xff]  ;;  %v494_v1 = vld [vmem:[%s978_s0 + $0x1d0] sm:$0xff]  ;;  %v814_v3 = vld [vmem:[%s979_s1] sm:$0xff]  ;;  %v570_v4 = vpack.c.bf16 %v472_v60, %v471_v59 }
  0x10   :  { %526 = vmatpush1.bf16.msra.mxu0 %v525_v24  ;;  %v467_v2 = vld [vmem:[%s978_s0 + $0x128] sm:$0x3f]  ;;  %v597_v5 = vpack.c.bf16 %v494_v1, %v493_v63  ;;  %v473_v6 = vld [vmem:[%s978_s0 + $0x140] sm:$0xff]  ;;  %v495_v8 = vld [vmem:[%s978_s0 + $0x1d8] sm:$0xff] }
  0x11   :  { %553 = vmatpush1.bf16.msra.mxu1 %v552_v25  ;;  %527 = vmatprep.subr.bf16.mxu0 %v627_v0  ;;  %v474_v7 = vld [vmem:[%s978_s0 + $0x148] sm:$0xff]  ;;  %v496_v9 = vld [vmem:[%s978_s0 + $0x1e0] sm:$0xff]  ;;  %v836_v10 = vld [vmem:[%s979_s1 + $0x18] sm:$0xff] }
  0x12   :  { %554 = vmatprep.subr.bf16.mxu1 %v627_v0  ;;  %432 = vperm.xlu0 %626, %v424_v54   ;;  %v573_v11 = vpack.c.bf16 %v474_v7, %v473_v6  ;;  %v842_v12 = vld [vmem:[%s979_s1 + $0x10] sm:$0xff]  ;;  %v600_v13 = vpack.c.bf16 %v496_v9, %v495_v8  ;;  %v476_v15 = vld [vmem:[%s978_s0 + $0x158] sm:$0xff]  ;;  %v497_v16 = vld [vmem:[%s978_s0 + $0x1e8] sm:$0xff] }
  0x13   :  { %v475_v14 = vld [vmem:[%s978_s0 + $0x150] sm:$0xff]  ;;  %v477_v20 = vld [vmem:[%s978_s0 + $0x160] sm:$0xff]  ;;  %v478_v21 = vld [vmem:[%s978_s0 + $0x168] sm:$0xff] }
  0x14   :  { %529 = vmatpush1.bf16.msra.mxu0 %v528_v31  ;;  %v498_v17 = vld [vmem:[%s978_s0 + $0x1f0] sm:$0xff]  ;;  %v576_v18 = vpack.c.bf16 %v476_v15, %v475_v14  ;;  %v499_v22 = vld [vmem:[%s978_s0 + $0x1f8] sm:$0xff]  ;;  %v500_v23 = vld [vmem:[%s978_s0 + $0x200] sm:$0xff]  ;;  %v579_v24 = vpack.c.bf16 %v478_v21, %v477_v20 }
  0x15   :  { %556 = vmatpush1.bf16.msra.mxu1 %v555_v32  ;;  %530 = vmatprep.subr.bf16.mxu0 %v627_v0  ;;  %v603_v19 = vpack.c.bf16 %v498_v17, %v497_v16  ;;  %v606_v25 = vpack.c.bf16 %v500_v23, %v499_v22  ;;  %v479_v26 = vld [vmem:[%s978_s0 + $0x170] sm:$0xff]  ;;  %v480_v27 = vld [vmem:[%s978_s0 + $0x178] sm:$0xff]  ;;  %v481_v32 = vld [vmem:[%s978_s0 + $0x180] sm:$0xff] }
  0x16   :  { %557 = vmatprep.subr.bf16.mxu1 %v627_v0  ;;  %v502_v29 = vld [vmem:[%s978_s0 + $0x210] sm:$0xff]  ;;  %v582_v30 = vpack.c.bf16 %v480_v27, %v479_v26  ;;  %v482_v33 = vld [vmem:[%s978_s0 + $0x188] sm:$0xff]  ;;  %v503_v34 = vld [vmem:[%s978_s0 + $0x218] sm:$0xff] }
  0x17   :  { %v504_v35 = vld [vmem:[%s978_s0 + $0x220] sm:$0xff]  ;;  %v585_v36 = vpack.c.bf16 %v482_v33, %v481_v32  ;;  %v484_v39 = vld [vmem:[%s978_s0 + $0x198] sm:$0xff]  ;;  %v505_v40 = vld [vmem:[%s978_s0 + $0x228] sm:$0xff] }
  0x18   :  { %532 = vmatpush1.bf16.msra.mxu0 %v531_v37  ;;  %v612_v37 = vpack.c.bf16 %v504_v35, %v503_v34  ;;  %v506_v41 = vld [vmem:[%s978_s0 + $0x230] sm:$0xff]  ;;  %v486_v45 = vld [vmem:[%s978_s0 + $0x1a8] sm:$0xff]  ;;  %v507_v46 = vld [vmem:[%s978_s0 + $0x238] sm:$0xff] }
  0x19   :  { %559 = vmatpush1.bf16.msra.mxu1 %v558_v38  ;;  %533 = vmatprep.subr.bf16.mxu0 %v627_v0  ;;  %v483_v38 = vld [vmem:[%s978_s0 + $0x190] sm:$0xff]  ;;  %v508_v47 = vld [vmem:[%s978_s0 + $0x240] sm:$0xff]  ;;  %v509_v52 = vld [vmem:[%s978_s0 + $0x248] sm:$0xff] }
  0x1a   :  { %560 = vmatprep.subr.bf16.mxu1 %v627_v0  ;;  %v588_v42 = vpack.c.bf16 %v484_v39, %v483_v38  ;;  %v618_v49 = vpack.c.bf16 %v508_v47, %v507_v46  ;;  %v510_v53 = vld [vmem:[%s978_s0 + $0x250] sm:$0xff]  ;;  %v489_v56 = vld [vmem:[%s978_s0 + $0x1c0] sm:$0x3f] }
  0x1b   :  { %v621_v55 = vpack.c.bf16 %v510_v53, %v509_v52 }
  0x1c   :  { %535 = vmatpush1.bf16.msra.mxu0 %v534_v43  ;;  %v615_v43 = vpack.c.bf16 %v506_v41, %v505_v40 }
  0x1d   :  { %562 = vmatpush1.bf16.msra.mxu1 %v561_v44  ;;  %536 = vmatprep.subr.bf16.mxu0 %v627_v0  ;;  %v485_v44 = vld [vmem:[%s978_s0 + $0x1a0] sm:$0xff] }
  0x1e   :  { %563 = vmatprep.subr.bf16.mxu1 %v627_v0  ;;  %v591_v48 = vpack.c.bf16 %v486_v45, %v485_v44 }
  0x20   :  { %538 = vmatpush1.bf16.msra.mxu0 %v537_v50  ;;  %v487_v50 = vld [vmem:[%s978_s0 + $0x1b0] sm:$0xff] }
  0x21   :  { %565 = vmatpush1.bf16.msra.mxu1 %v564_v51  ;;  %539 = vmatprep.subr.bf16.mxu0 %v627_v0  ;;  %v488_v51 = vld [vmem:[%s978_s0 + $0x1b8] sm:$0xff] }
  0x22   :  { %566 = vmatprep.subr.bf16.mxu1 %v627_v0  ;;  %v594_v54 = vpack.c.bf16 %v488_v51, %v487_v50 }
  0x24   :  { %541 = vmatpush1.bf16.msra.mxu0 %v540_v57  ;;  %v511_v57 = vld [vmem:[%s978_s0 + $0x258] sm:$0x3f] }
  0x25   :  { %568 = vmatpush1.bf16.msra.mxu1 %v567_v58  ;;  %84 = vmatprep.subr.mxu0 %v629_v61 }
  0x26   :  { %182 = vmatprep.subr.mxu1 %v629_v61 }
  0x28   :  { %446 = vmatpush1.msk.msra.mxu0 %vm44_vm1, %v36_v62 }
  0x29   :  { %468 = vmatpush1.msk.msra.mxu1 %vm44_vm1, %v467_v2  ;;  %113 = vmatmul.mubr.f32.vlgmr.msra.gmra.mrb[0].mxu0 %v814_v3 }
  0x2a   :  { %211 = vmatmul.mubr.f32.vlgmr.msra.gmra.mrb[0].mxu1 %v814_v3  ;;  %569 = vmatprep.subr.bf16.mxu0 %v627_v0 }
  0x2b   :  { %596 = vmatprep.subr.bf16.mxu1 %v627_v0  ;;  %571 = vmatpush1.bf16.msra.mxu0 %v570_v4 }
  0x2c   :  { %598 = vmatpush1.bf16.msra.mxu1 %v597_v5  ;;  %572 = vmatprep.subr.bf16.mxu0 %v627_v0 }
  0x2d   :  { %599 = vmatprep.subr.bf16.mxu1 %v627_v0  ;;  %448 = vmatprep.mubr.msk.f32.mxu0 %vm37_vm0, %v836_v10 }
  0x2e   :  { %470 = vmatprep.mubr.msk.f32.mxu1 %vm37_vm0, %v836_v10  ;;  %118 = vmatmul.mubr.f32.gmra.mrb[2].mxu0 %v842_v12 }
  0x2f   :  { %574 = vmatpush1.bf16.msra.mxu0 %v573_v11  ;;  %216 = vmatmul.mubr.f32.gmra.mrb[2].mxu1 %v842_v12 }
  0x30   :  { %601 = vmatpush1.bf16.msra.mxu1 %v600_v13  ;;  %575 = vmatprep.subr.bf16.mxu0 %v627_v0 }
  0x31   :  { %602 = vmatprep.subr.bf16.mxu1 %v627_v0  ;;  %491 = vmatprep.mubr.msk.f32.mxu0 %vm37_vm0, %v714_v28 }
  0x32   :  { %513 = vmatprep.mubr.msk.f32.mxu1 %vm37_vm0, %v714_v28  ;;  %v501_v28 = vld [vmem:[%s978_s0 + $0x208] sm:$0xff] }
  0x33   :  { %577 = vmatpush1.bf16.msra.mxu0 %v576_v18  ;;  %v609_v31 = vpack.c.bf16 %v502_v29, %v501_v28 }
  0x34   :  { %604 = vmatpush1.bf16.msra.mxu1 %v603_v19  ;;  %578 = vmatprep.subr.bf16.mxu0 %v627_v0 }
  0x35   :  { %605 = vmatprep.subr.bf16.mxu1 %v627_v0 }
  0x37   :  { %580 = vmatpush1.bf16.msra.mxu0 %v579_v24 }
  0x38   :  { %607 = vmatpush1.bf16.msra.mxu1 %v606_v25  ;;  %581 = vmatprep.subr.bf16.mxu0 %v627_v0 }
  0x39   :  { %608 = vmatprep.subr.bf16.mxu1 %v627_v0 }
  0x3b   :  { %583 = vmatpush1.bf16.msra.mxu0 %v582_v30 }
  0x3c   :  { %610 = vmatpush1.bf16.msra.mxu1 %v609_v31  ;;  %584 = vmatprep.subr.bf16.mxu0 %v627_v0 }
  0x3d   :  { %611 = vmatprep.subr.bf16.mxu1 %v627_v0 }
  0x3f   :  { %586 = vmatpush1.bf16.msra.mxu0 %v585_v36 }
  0x40   :  { %613 = vmatpush1.bf16.msra.mxu1 %v612_v37  ;;  %587 = vmatprep.subr.bf16.mxu0 %v627_v0 }
  0x41   :  { %614 = vmatprep.subr.bf16.mxu1 %v627_v0 }
  0x43   :  { %589 = vmatpush1.bf16.msra.mxu0 %v588_v42 }
  0x44   :  { %616 = vmatpush1.bf16.msra.mxu1 %v615_v43  ;;  %590 = vmatprep.subr.bf16.mxu0 %v627_v0 }
  0x45   :  { %617 = vmatprep.subr.bf16.mxu1 %v627_v0 }
  0x47   :  { %592 = vmatpush1.bf16.msra.mxu0 %v591_v48 }
  0x48   :  { %619 = vmatpush1.bf16.msra.mxu1 %v618_v49  ;;  %593 = vmatprep.subr.bf16.mxu0 %v627_v0 }
  0x49   :  { %620 = vmatprep.subr.bf16.mxu1 %v627_v0 }
  0x4b   :  { %595 = vmatpush1.bf16.msra.mxu0 %v594_v54 }
  0x4c   :  { %622 = vmatpush1.bf16.msra.mxu1 %v621_v55  ;;  %280 = vmatprep.subr.mxu0 %v629_v61 }
  0x4d   :  { %378 = vmatprep.subr.mxu1 %v629_v61 }
  0x4f   :  { %490 = vmatpush1.msk.msra.mxu0 %vm44_vm1, %v489_v56 }
  0x50   :  { %512 = vmatpush1.msk.msra.mxu1 %vm44_vm1, %v511_v57  ;;  %309 = vmatmul.mubr.f32.vlgmr.msra.gmra.mrb[4].mxu0 %v814_v3 }
  0x51   :  { %407 = vmatmul.mubr.f32.vlgmr.msra.gmra.mrb[4].mxu1 %v814_v3  ;;  %492 = vmatprep.mubr.msk.f32.mxu0 %vm37_vm0, %v836_v10 }
  0x52   :  { %514 = vmatprep.mubr.msk.f32.mxu1 %vm37_vm0, %v836_v10 }
  0x54   :  { %314 = vmatmul.mubr.f32.gmra.mrb[6].mxu0 %v842_v12 }
  0x55   :  { %412 = vmatmul.mubr.f32.gmra.mrb[6].mxu1 %v842_v12 }
  0x8d   :  { %v428_v9 = vpop.permute.xlu0 %427 }
  0x91   :  { %v433_v19 = vpop.permute.xlu0 %432 }
  0xfc   :  { %v114_v0 = vpop.f32.mrb[0].mxu0 }
  0xfd   :  { %v212_v58 = vpop.f32.mrb[0].mxu1  ;;  %v116_v59 = vpop.f32.mrb[1].mxu0 }
  0xfe   :  { %v417_v60 = vmax.f32 %v114_v0, %v212_v58  ;;  %v214_v61 = vpop.f32.mrb[1].mxu1 }
 0x101   :  { %v119_v62 = vpop.f32.mrb[2].mxu0 }
 0x102   :  { %v217_v63 = vpop.f32.mrb[2].mxu1  ;;  %v121_v1 = vpop.f32.mrb[3].mxu0 }
 0x103   :  { %v418_v2 = vmax.f32 %v119_v62, %v217_v63  ;;  %v219_v3 = vpop.f32.mrb[3].mxu1 }
 0x123   :  { %v310_v4 = vpop.f32.mrb[4].mxu0 }
 0x124   :  { %v408_v5 = vpop.f32.mrb[4].mxu1  ;;  %v312_v6 = vpop.f32.mrb[5].mxu0 }
 0x125   :  { %v419_v7 = vmax.f32 %v310_v4, %v408_v5  ;;  %v410_v8 = vpop.f32.mrb[5].mxu1 }
 0x127   :  { %v421_v10 = vmax.f32 %v417_v60, %v419_v7  ;;  %v315_v11 = vpop.f32.mrb[6].mxu0 }
 0x128   :  { %v413_v13 = vpop.f32.mrb[6].mxu1  ;;  %v317_v12 = vpop.f32.mrb[7].mxu0 }
 0x129   :  { %v435_v14 = vadd.f32 %v428_v9, %v421_v10  ;;  %v420_v15 = vmax.f32 %v315_v11, %v413_v13  ;;  %v415_v16 = vpop.f32.mrb[7].mxu1 }
 0x12b   :  { %v437_v17 = vmax.f32 %v435_v14, 0.0  ;;  %v422_v18 = vmax.f32 %v418_v2, %v420_v15 }
 0x12d   :  { %440 = vst.msk [vmem:[%s981_s3] sm:$0xff] %vm439_vm2, %v437_v17  ;;  %v436_v20 = vadd.f32 %v433_v19, %v422_v18 }
 0x12f   :  { %v438_v21 = vmax.f32 %v436_v20, 0.0 }
 0x131   :  { %441 = vst.msk [vmem:[%s981_s3 + $0x8] sm:$0xff] %vm439_vm2, %v438_v21 }

// kernel: net_forward.5
= control target key start
LH: loop header
LB: loop body
LE: loop exit
PB: predicated region body
PF: predicated region fallthrough
CT: control target
= control target key end

     0   :  { %v824_v4 = vmov 0.0|0.0   ;;  %v825_v26 = vmov 1983009808   ;;  %v96_v28 = vlaneseq  ;;  %vm112_vm0 = vcmask 130048   ;;  %s1166_s0 = inlined_call_operand.vmem [shape: f32[2,400], index: 0, kind: input, shape index: {}]   ;;  %s1167_s1 = inlined_call_operand.vmem [shape: f32[400,120], index: 1, kind: input, shape index: {}]   ;;  %s1168_s2 = inlined_call_operand.vmem [shape: f32[1,120], index: 2, kind: input, shape index: {}]   ;;  %s1169_s3 = inlined_call_operand.vmem [shape: f32[120,84], index: 3, kind: input, shape index: {}]   ;;  %s1170_s4 = inlined_call_operand.vmem [shape: f32[1,84], index: 4, kind: input, shape index: {}]   ;;  %s1171_s5 = inlined_call_operand.vmem [shape: f32[84,10], index: 5, kind: input, shape index: {}]   ;;  %s1172_s6 = inlined_call_operand.vmem [shape: f32[1,10], index: 6, kind: input, shape index: {}]   ;;  %s1173_s7 = inlined_call_operand.vmem [shape: f32[10,2], index: 7, kind: input, shape index: {}]   ;;  %s1174_s8 = inlined_call_operand.vmem [shape: f32[1,2], index: 8, kind: input, shape index: {}]   ;;  %s1175_s9 = inlined_call_operand.hbm [shape: f32[2,2], index: 9, kind: output, shape index: {}]  }
   0x1   :  { %v50_v0 = vld [vmem:[%s1167_s1 + $0x80] sm:$0xff]  ;;  %v51_v1 = vld [vmem:[%s1167_s1 + $0x88] sm:$0xff]  ;;  %726 = vmatprep.subr.bf16.mxu1 %v824_v4  ;;  %v52_v10 = vld [vmem:[%s1167_s1 + $0x90] sm:$0xff]  ;;  %v94_v27 = vunpack.c.l.s4 %v825_v26 }
   0x2   :  { %v34_v2 = vld [vmem:[%s1167_s1] sm:$0xff]  ;;  %v694_v3 = vpack.c.bf16 %v51_v1, %v50_v0  ;;  %v35_v5 = vld [vmem:[%s1167_s1 + $0x8] sm:$0xff]  ;;  %v53_v11 = vld [vmem:[%s1167_s1 + $0x98] sm:$0xff]  ;;  %v97_v39 = vshrl.u32 %v96_v28, 7 }
   0x3   :  { %v66_v6 = vld [vmem:[%s1167_s1 + $0x100] sm:$0xff]  ;;  %v67_v7 = vld [vmem:[%s1167_s1 + $0x108] sm:$0xff]  ;;  %v696_v8 = vpack.c.bf16 %v35_v5, %v34_v2  ;;  %v36_v12 = vld [vmem:[%s1167_s1 + $0x10] sm:$0xff]  ;;  %v698_v13 = vpack.c.bf16 %v53_v11, %v52_v10  ;;  %v95_v38 = vunpack.c.0.s8 %v94_v27 }
   0x4   :  { %v727_v9 = vpack.c.bf16 %v67_v7, %v66_v6  ;;  %695 = vmatprep.subr.bf16.mxu0 %v694_v3  ;;  %v37_v14 = vld [vmem:[%s1167_s1 + $0x18] sm:$0xff]  ;;  %v68_v15 = vld [vmem:[%s1167_s1 + $0x110] sm:$0xff]  ;;  %v54_v19 = vld [vmem:[%s1167_s1 + $0xa0] sm:$0xff] }
   0x5   :  { %v69_v16 = vld [vmem:[%s1167_s1 + $0x118] sm:$0xff]  ;;  %697 = vmatpush3.bf16.msra.mxu0 %v696_v8  ;;  %v700_v17 = vpack.c.bf16 %v37_v14, %v36_v12  ;;  %v55_v20 = vld [vmem:[%s1167_s1 + $0xa8] sm:$0xff]  ;;  %v38_v21 = vld [vmem:[%s1167_s1 + $0x20] sm:$0xff]  ;;  %v98_v49 = vsub.s32 %v95_v38, %v97_v39 }
   0x6   :  { %728 = vmatpush1.bf16.msra.mxu1 %v727_v9  ;;  %v730_v18 = vpack.c.bf16 %v69_v16, %v68_v15  ;;  %699 = vmatprep.subr.bf16.mxu0 %v698_v13  ;;  %v702_v22 = vpack.c.bf16 %v55_v20, %v54_v19  ;;  %v39_v23 = vld [vmem:[%s1167_s1 + $0x28] sm:$0xff]  ;;  %v70_v24 = vld [vmem:[%s1167_s1 + $0x120] sm:$0xff]  ;;  %v56_v29 = vld [vmem:[%s1167_s1 + $0xb0] sm:$0xff] }
   0x7   :  { %729 = vmatprep.subr.bf16.mxu1 %v824_v4  ;;  %v71_v25 = vld [vmem:[%s1167_s1 + $0x128] sm:$0xff]  ;;  %v57_v30 = vld [vmem:[%s1167_s1 + $0xb8] sm:$0xff]  ;;  %v704_v31 = vpack.c.bf16 %v39_v23, %v38_v21  ;;  %v40_v33 = vld [vmem:[%s1167_s1 + $0x30] sm:$0xff] }
   0x8   :  { %v733_v32 = vpack.c.bf16 %v71_v25, %v70_v24  ;;  %v706_v34 = vpack.c.bf16 %v57_v30, %v56_v29  ;;  %v41_v35 = vld [vmem:[%s1167_s1 + $0x38] sm:$0xff]  ;;  %v72_v36 = vld [vmem:[%s1167_s1 + $0x130] sm:$0xff]  ;;  %v58_v40 = vld [vmem:[%s1167_s1 + $0xc0] sm:$0xff] }
   0x9   :  { %701 = vmatpush3.bf16.msra.mxu0 %v700_v17  ;;  %v73_v37 = vld [vmem:[%s1167_s1 + $0x138] sm:$0xff]  ;;  %v59_v41 = vld [vmem:[%s1167_s1 + $0xc8] sm:$0xff]  ;;  %v708_v42 = vpack.c.bf16 %v41_v35, %v40_v33  ;;  %v42_v44 = vld [vmem:[%s1167_s1 + $0x40] sm:$0xff] }
   0xa   :  { %731 = vmatpush1.bf16.msra.mxu1 %v730_v18  ;;  %703 = vmatprep.subr.bf16.mxu0 %v702_v22  ;;  %v736_v43 = vpack.c.bf16 %v73_v37, %v72_v36  ;;  %v710_v45 = vpack.c.bf16 %v59_v41, %v58_v40  ;;  %v43_v46 = vld [vmem:[%s1167_s1 + $0x48] sm:$0xff]  ;;  %v74_v47 = vld [vmem:[%s1167_s1 + $0x140] sm:$0xff]  ;;  %v60_v50 = vld [vmem:[%s1167_s1 + $0xd0] sm:$0xff] }
   0xb   :  { %732 = vmatprep.subr.bf16.mxu1 %v824_v4  ;;  %v75_v48 = vld [vmem:[%s1167_s1 + $0x148] sm:$0xff]  ;;  %v61_v51 = vld [vmem:[%s1167_s1 + $0xd8] sm:$0xff]  ;;  %v712_v52 = vpack.c.bf16 %v43_v46, %v42_v44  ;;  %v44_v54 = vld [vmem:[%s1167_s1 + $0x50] sm:$0xff] }
   0xc   :  { %v739_v53 = vpack.c.bf16 %v75_v48, %v74_v47  ;;  %v33_v55 = vld [vmem:[%s1166_s0] sm:$0xff]  ;;  %v714_v56 = vpack.c.bf16 %v61_v51, %v60_v50  ;;  %v45_v57 = vld [vmem:[%s1167_s1 + $0x58] sm:$0xff]  ;;  %v76_v58 = vld [vmem:[%s1167_s1 + $0x150] sm:$0xff] }
   0xd   :  { %705 = vmatpush3.bf16.msra.mxu0 %v704_v31  ;;  %v77_v59 = vld [vmem:[%s1167_s1 + $0x158] sm:$0xff]  ;;  %v92_v60 = vcombine.high %v33_v55, %v33_v55  ;;  %v99_v61 = vrot.slane %v33_v55, %v98_v49  ;;  %v62_v62 = vld [vmem:[%s1167_s1 + $0xe0] sm:$0xff]  ;;  %v63_v63 = vld [vmem:[%s1167_s1 + $0xe8] sm:$0xff]  ;;  %v716_v2 = vpack.c.bf16 %v45_v57, %v44_v54 }
   0xe   :  { %734 = vmatpush1.bf16.msra.mxu1 %v733_v32  ;;  %707 = vmatprep.subr.bf16.mxu0 %v706_v34  ;;  %v742_v3 = vpack.c.bf16 %v77_v59, %v76_v58  ;;  %v46_v5 = vld [vmem:[%s1167_s1 + $0x60] sm:$0xff] }
   0xf   :  { %735 = vmatprep.subr.bf16.mxu1 %v824_v4  ;;  %v107_v0 = vcombine.high %v99_v61, %v99_v61  ;;  %v106_v1 = vrot.slane %v92_v60, %v98_v49 }
  0x11   :  { %709 = vmatpush3.bf16.msra.mxu0 %v708_v42 }
  0x12   :  { %737 = vmatpush1.bf16.msra.mxu1 %v736_v43  ;;  %711 = vmatprep.subr.bf16.mxu0 %v710_v45 }
  0x13   :  { %738 = vmatprep.subr.bf16.mxu1 %v824_v4 }
  0x15   :  { %713 = vmatpush3.bf16.msra.mxu0 %v712_v52 }
  0x16   :  { %740 = vmatpush1.bf16.msra.mxu1 %v739_v53 }
  0x17   :  { %14 = vsyncpa [#allocation3], 0  ;;  %715 = vmatprep.subr.bf16.mxu0 %v714_v56  ;;  %741 = vmatprep.subr.bf16.mxu1 %v824_v4  ;;  %v718_v6 = vpack.c.bf16 %v63_v63, %v62_v62  ;;  %v47_v7 = vld [vmem:[%s1167_s1 + $0x68] sm:$0xff]  ;;  %v78_v8 = vld [vmem:[%s1167_s1 + $0x160] sm:$0xff]  ;;  %v108_v10 = vcombine.high %v106_v1, %v106_v1  ;;  %v826_v46 = vmov 0.0   ;;  %vm827_vm1 = vmmov 0  }
  0x18   :  { %v79_v9 = vld [vmem:[%s1167_s1 + $0x168] sm:$0xff]  ;;  %v64_v11 = vld [vmem:[%s1167_s1 + $0xf0] sm:$0xff]  ;;  %v65_v12 = vld [vmem:[%s1167_s1 + $0xf8] sm:$0xff]  ;;  %179 = vmatprep.mubr.f32.mxu0 %v107_v0  ;;  %v720_v13 = vpack.c.bf16 %v47_v7, %v46_v5  ;;  %vm278_vm2 = vcmask 982016   ;;  %vm375_vm3 = vcmask 1043456   ;;  %vm371_vm4 = vcmask 687104  }
  0x19   :  { %554 = vmatprep.mubr.msk.f32.mxu1 %vm112_vm0, %v108_v10  ;;  %717 = vmatpush3.bf16.msra.mxu0 %v716_v2  ;;  %v745_v14 = vpack.c.bf16 %v79_v9, %v78_v8  ;;  %v48_v15 = vld [vmem:[%s1167_s1 + $0x70] sm:$0xff]  ;;  %v722_v16 = vpack.c.bf16 %v65_v12, %v64_v11  ;;  %v49_v17 = vld [vmem:[%s1167_s1 + $0x78] sm:$0xff]  ;;  %v82_v22 = vld [vmem:[%s1167_s1 + $0x180] sm:$0xff]  ;;  %vm463_vm5 = vcmask 1041408   ;;  %vm828_vm6 = vmmov 1  }
  0x1a   :  { %743 = vmatpush1.bf16.msra.mxu1 %v742_v3  ;;  %719 = vmatprep.subr.bf16.mxu0 %v718_v6  ;;  %v80_v18 = vld [vmem:[%s1167_s1 + $0x170] sm:$0xff]  ;;  %v81_v19 = vld [vmem:[%s1167_s1 + $0x178] sm:$0xff]  ;;  %v724_v20 = vpack.c.bf16 %v49_v17, %v48_v15  ;;  %v83_v23 = vld [vmem:[%s1167_s1 + $0x188] sm:$0xff]  ;;  %vm459_vm8 = vcmask 80896   ;;  %vm537_vm9 = vcmask 9216  }
  0x1b   :  { %744 = vmatprep.subr.bf16.mxu1 %v824_v4  ;;  %v748_v21 = vpack.c.bf16 %v81_v19, %v80_v18  ;;  %v256_v24 = vld [vmem:[%s1169_s3] sm:$0xff]  ;;  %v257_v25 = vld [vmem:[%s1169_s3 + $0x8] sm:$0xff]  ;;  %v751_v26 = vpack.c.bf16 %v83_v23, %v82_v22  ;;  %v258_v28 = vld [vmem:[%s1169_s3 + $0x10] sm:$0xff] }
  0x1c   :  { %v754_v27 = vpack.c.bf16 %v257_v25, %v256_v24  ;;  %v259_v29 = vld [vmem:[%s1169_s3 + $0x18] sm:$0xff]  ;;  %v260_v31 = vld [vmem:[%s1169_s3 + $0x20] sm:$0xff]  ;;  %v261_v32 = vld [vmem:[%s1169_s3 + $0x28] sm:$0xff] }
  0x1d   :  { %721 = vmatpush3.bf16.msra.mxu0 %v720_v13  ;;  %v757_v30 = vpack.c.bf16 %v259_v29, %v258_v28  ;;  %v760_v33 = vpack.c.bf16 %v261_v32, %v260_v31  ;;  %v262_v34 = vld [vmem:[%s1169_s3 + $0x30] sm:$0xff]  ;;  %v263_v35 = vld [vmem:[%s1169_s3 + $0x38] sm:$0xff]  ;;  %v264_v37 = vld [vmem:[%s1169_s3 + $0x40] sm:$0xff] }
  0x1e   :  { %746 = vmatpush1.bf16.msra.mxu1 %v745_v14  ;;  %723 = vmatprep.subr.bf16.mxu0 %v722_v16  ;;  %v763_v36 = vpack.c.bf16 %v263_v35, %v262_v34  ;;  %v265_v38 = vld [vmem:[%s1169_s3 + $0x48] sm:$0xff]  ;;  %v266_v40 = vld [vmem:[%s1169_s3 + $0x50] sm:$0xff]  ;;  %v267_v41 = vld [vmem:[%s1169_s3 + $0x58] sm:$0xff] }
  0x1f   :  { %747 = vmatprep.subr.bf16.mxu1 %v824_v4  ;;  %v766_v39 = vpack.c.bf16 %v265_v38, %v264_v37  ;;  %v769_v42 = vpack.c.bf16 %v267_v41, %v266_v40  ;;  %v268_v43 = vld [vmem:[%s1169_s3 + $0x60] sm:$0xff]  ;;  %v269_v44 = vld [vmem:[%s1169_s3 + $0x68] sm:$0xff]  ;;  %v270_v47 = vld [vmem:[%s1169_s3 + $0x70] sm:$0xff] }
  0x20   :  { %v772_v45 = vpack.c.bf16 %v269_v44, %v268_v43  ;;  %v353_v48 = vld [vmem:[%s1171_s5] sm:$0xff]  ;;  %v354_v49 = vld [vmem:[%s1171_s5 + $0x8] sm:$0xff]  ;;  %v355_v50 = vld [vmem:[%s1171_s5 + $0x10] sm:$0xff] }
  0x21   :  { %725 = vmatpush3.bf16.msra.mxu0 %v724_v20  ;;  %v775_v51 = vpack.c.bf16 %v354_v49, %v353_v48  ;;  %v356_v52 = vld [vmem:[%s1171_s5 + $0x18] sm:$0xff]  ;;  %v357_v54 = vld [vmem:[%s1171_s5 + $0x20] sm:$0xff]  ;;  %v358_v55 = vld [vmem:[%s1171_s5 + $0x28] sm:$0xff] }
  0x22   :  { %749 = vmatpush1.bf16.msra.mxu1 %v748_v21  ;;  %753 = vmatprep.subr.bf16.mxu0 %v824_v4  ;;  %v778_v53 = vpack.c.bf16 %v356_v52, %v355_v50  ;;  %v781_v56 = vpack.c.bf16 %v358_v55, %v357_v54  ;;  %v359_v57 = vld [vmem:[%s1171_s5 + $0x30] sm:$0xff]  ;;  %v360_v58 = vld [vmem:[%s1171_s5 + $0x38] sm:$0xff]  ;;  %v553_v62 = vld [vmem:[%s1168_s2] ss:$0 sm:$0xff] }
  0x23   :  { %750 = vmatprep.subr.bf16.mxu1 %v824_v4  ;;  %v784_v59 = vpack.c.bf16 %v360_v58, %v359_v57  ;;  %v361_v6 = vld [vmem:[%s1171_s5 + $0x40] sm:$0xff]  ;;  %v362_v7 = vld [vmem:[%s1171_s5 + $0x48] sm:$0xff]  ;;  %v363_v9 = vld [vmem:[%s1171_s5 + $0x50] sm:$0xf] }
  0x24   :  { %180 = vmatmul.mubr.f32.vlgmr.msra.gmra.mrb[0].mxu0 %v99_v61  ;;  %v787_v8 = vpack.c.bf16 %v362_v7, %v361_v6  ;;  %v555_v10 = vld [vmem:[%s1170_s4] ss:$0 sm:$0xff]  ;;  %vm791_vm7 = vmpackc.low %vm463_vm5, %vm828_vm6 }
  0x25   :  { %755 = vmatpush3.bf16.msra.mxu0 %v754_v27  ;;  %659 = vmatprep.mubr.msk.f32.mxu0 %vm827_vm1, %v826_v46  ;;  %v450_v15 = vld [vmem:[%s1173_s7] sm:$0xff] }
  0x26   :  { %752 = vmatpush1.bf16.msra.mxu1 %v751_v26  ;;  %756 = vmatprep.subr.bf16.mxu0 %v824_v4  ;;  %v557_v17 = vld [vmem:[%s1172_s6] ss:$0 sm:$0xff] }
  0x27   :  { %774 = vmatprep.subr.bf16.mxu1 %v824_v4  ;;  %v560_v22 = vld [vmem:[%s1174_s8] ss:$0 sm:$0xff] }
  0x29   :  { %250 = vmatmul.mubr.f32.vlgmr.msra.gmra.mrb[0].mxu1 %v106_v1  ;;  %758 = vmatpush3.bf16.msra.mxu0 %v757_v30 }
  0x2a   :  { %759 = vmatprep.subr.bf16.mxu0 %v824_v4  ;;  %684 = vmatprep.mubr.msk.f32.mxu1 %vm827_vm1, %v826_v46 }
  0x2b   :  { %776 = vmatpush3.bf16.msra.mxu1 %v775_v51 }
  0x2c   :  { %777 = vmatprep.subr.bf16.mxu1 %v824_v4 }
  0x2d   :  { %761 = vmatpush3.bf16.msra.mxu0 %v760_v33 }
  0x2e   :  { %762 = vmatprep.subr.bf16.mxu0 %v824_v4 }
  0x2f   :  { %779 = vmatpush3.bf16.msra.mxu1 %v778_v53 }
  0x30   :  { %780 = vmatprep.subr.bf16.mxu1 %v824_v4 }
  0x31   :  { %764 = vmatpush3.bf16.msra.mxu0 %v763_v36 }
  0x32   :  { %765 = vmatprep.subr.bf16.mxu0 %v824_v4 }
  0x33   :  { %782 = vmatpush3.bf16.msra.mxu1 %v781_v56 }
  0x34   :  { %783 = vmatprep.subr.bf16.mxu1 %v824_v4 }
  0x35   :  { %767 = vmatpush3.bf16.msra.mxu0 %v766_v39 }
  0x36   :  { %768 = vmatprep.subr.bf16.mxu0 %v824_v4 }
  0x37   :  { %785 = vmatpush3.bf16.msra.mxu1 %v784_v59 }
  0x38   :  { %786 = vmatprep.subr.bf16.mxu1 %v824_v4 }
  0x39   :  { %770 = vmatpush3.bf16.msra.mxu0 %v769_v42 }
  0x3a   :  { %771 = vmatprep.subr.bf16.mxu0 %v824_v4 }
  0x3b   :  { %788 = vmatpush3.bf16.msra.mxu1 %v787_v8 }
  0x3c   :  { %682 = vmatprep.subr.mxu1 %v826_v46 }
  0x3d   :  { %773 = vmatpush3.bf16.msra.mxu0 %v772_v45 }
  0x3e   :  { %657 = vmatprep.subr.mxu0 %v826_v46 }
  0x3f   :  { %683 = vmatpush3.msk.msra.mxu1 %vm375_vm3, %v363_v9 }
  0x40   :  { %789 = vmatprep.subr.bf16.mxu1 %v824_v4  ;;  %v451_v4 = vld [vmem:[%s1173_s7 + $0x8] sm:$0x3]  ;;  %s829_s7 = smov [#allocation2]  }
  0x41   :  { %658 = vmatpush3.msra.mxu0 %v270_v47  ;;  %v790_v16 = vpack.c.bf16 %v451_v4, %v450_v15  ;;  %s545_s16 = sshll.u32 %s829_s7, 4  ;;  %s546_s16 = int_to_ptr.vmem [resolvable:$true] %s545_s16 }
  0x42   :  { %s800_s17 = scalar_lea.vmem %s546_s16, 32  ;;  %p805_p1 = scmp.lt.s32.totalorder %s546_s16, %s546_s16 }
  0x43   :  { %p801_p0 = scmp.ne.s32.totalorder %s546_s16, %s800_s17  ;;  %p806_p2 = scmp.lt.s32.totalorder %s800_s17, %s800_s17 }
  0x45   :  { %p807_p3 = por %p806_p2, %p805_p1 }
  0x47   :  { %p808_p4 = pnand %p807_p3, %p801_p0 }
  0xf7   :  { %v595_v60 = vpop.f32.mrb[0].mxu0 }
  0xf8   :  { %v596_v61 = vpop.f32.mrb[1].mxu0 }
  0xf9   :  { %v597_v63 = vadd.f32 %v596_v61, %v595_v60 }
  0xfb   :  { %v182_v0 = vadd.f32 %v597_v63, %v553_v62 }
  0xfc   :  { %v251_v1 = vpop.f32.mrb[0].mxu1 }
  0xfd   :  { %v253_v2 = vpop.f32.mrb[1].mxu1  ;;  %v252_v3 = vadd.f32 %v251_v1, %v182_v0 }
  0xff   :  { %v255_v5 = vmax.f32 %v252_v3, 0.0 }
 0x101   :  { %660 = vmatmul.mubr.msk.f32.vlgmr.msra.gmra.mrb[2].mxu0 %vm278_vm2, %v255_v5 }
 0x1d4   :  { %v348_v11 = vpop.f32.mrb[2].mxu0 }
 0x1d5   :  { %v349_v12 = vadd.f32 %v555_v10, %v348_v11  ;;  %v661_v13 = vpop.f32.mrb[3].mxu0 }
 0x1d7   :  { %v352_v14 = vmax.f32 %v349_v12, 0.0 }
 0x1d9   :  { %685 = vmatmul.mubr.msk.f32.vlgmr.msra.gmra.mrb[2].mxu1 %vm371_vm4, %v352_v14 }
 0x1da   :  { %691 = vmatprep.mubr.msk.f32.mxu1 %vm827_vm1, %v826_v46  ;;  %792 = vmatpush3.bf16.msk.msra.mxu1 %vm791_vm7, %v790_v16 }
 0x2ac   :  { %v445_v18 = vpop.f32.mrb[2].mxu1 }
 0x2ad   :  { %v446_v19 = vadd.f32 %v557_v17, %v445_v18  ;;  %v686_v20 = vpop.f32.mrb[3].mxu1 }
 0x2af   :  { %v449_v21 = vmax.f32 %v446_v19, 0.0 }
 0x2b1   :  { %692 = vmatmul.mubr.msk.f32.vlgmr.msra.gmra.mrb[4].mxu1 %vm459_vm8, %v449_v21 }
 0x384   :  { %v533_v23 = vpop.f32.mrb[4].mxu1 }
 0x385   :  { %v534_v24 = vadd.f32 %v560_v22, %v533_v23  ;;  %v693_v25 = vpop.f32.mrb[5].mxu1 }
 0x387   :  { %538 = vst.msk [vmem:[#allocation2] sm:$0x3] %vm537_vm9, %v534_v24 }
 0x388   :  { %811 = shalt.err (!%p808_p4)
}
 0x389   :  { %s812_s19 = scalar_lea.hbm %s1175_s9, 32 }
 0x38a   :  { %p813_p5 = scmp.ne.s32.totalorder %s1175_s9, %s812_s19  ;;  %p816_p6 = scmp.lt.u32.totalorder %s812_s19, %s1175_s9 }
 0x38c   :  { %p818_p7 = pnand %p816_p6, %p813_p5 }
 0x38e   :  { %821 = shalt.err (!%p818_p7)
}
 0x38f   :  { %548 = dma.vmem_to_hbm [thread:$0]  %s546_s16, 32, %s1175_s9, [#allocation3]  }
 0x390   :  { %822 = dma.done.wait [#allocation3], 32  }
 0x391   :  { %823 = vsyncadd [#allocation3], 4294967264 }
 0x392   :  { %552 = vsyncpa [#allocation3], 1 }

</bundles_post_ra>
